<compile_context>
chip_gen: v5e
topology: v5e:2x2
jax: 0.10.0
libtpu: 0.0.40
codegen_flags: <defaults>
</compile_context>

<pallas_src>
import functools

import jax
import jax.numpy as jnp
import numpy as np
from jax import lax
from jax.experimental import pallas as pl
from jax.experimental.pallas import tpu as pltpu

_C1, _C2, _C3 = 16, 32, 64   # conv channel widths fixed by the module


# ------------------------------ fused kernel --------------------------------

def _cnn_fused_kernel(x_ref, w1_ref, b1_ref, w2_ref, b2_ref, w3_ref, b3_ref,
                      wf_ref, bf_ref, o_ref, pool_ref, *, H, W):
    """Whole CNN forward for one batch block.

      x_ref : (Bt, H, W*Cinp)  bf16 lane-dense activation slab, cols (w, cin)
      wN_ref: (3*K_n, N_n)     bf16 concat-K banded conv weights
      bN_ref: (1, N_n)         f32 bias tiled over w
      wf_ref: (W3*64, out_dim) bf16 == tile(fc_w, W3) / (H3*W3)
      bf_ref: (1, out_dim)     f32
      o_ref : (Bt, out_dim)    f32
      pool_ref: (Bt*H, 8*W)    f32 scratch for the strided H-direction pool
    """
    Bt = x_ref.shape[0]
    H2, W2, H3, W3 = H // 2, W // 2, H // 4, W // 4

    def conv3x3_relu(x, w_ref, b_ref):
        # 3x3/SAME conv + bias + ReLU as ONE matmul with M = Bt*h, K = 3k.
        # The dx taps and W-direction zero padding live in the banded weight;
        # the H-direction neighbours are two row-shifted copies of x.
        bt, h, k = x.shape
        zrow = jnp.zeros((bt, 1, k), x.dtype)
        x_dn = jnp.concatenate([zrow, x[:, :h - 1, :]], axis=1)   # x[h-1]
        x_up = jnp.concatenate([x[:, 1:, :], zrow], axis=1)       # x[h+1]
        lhs = jnp.concatenate([x_dn, x, x_up], axis=2).reshape(bt * h, 3 * k)
        acc = jnp.dot(lhs, w_ref[...], preferred_element_type=jnp.float32)
        return jnp.maximum(acc + b_ref[...], 0.0)                 # (bt*h, n) f32

    def maxpool2x2(y, bt, h, half):
        # Columns are packed (w%2, w//2, c): W pool = max of the two lane
        # halves; H pool = strided sublane read pair via the VMEM scratch.
        m = bt * h
        yw = jnp.maximum(y[:, :half], y[:, half:])                # (m, half)
        pool_ref[pl.ds(0, m), :] = yw
        even = pool_ref[pl.ds(0, m // 2, 2), :]
        odd = pool_ref[pl.ds(1, m // 2, 2), :]
        return jnp.maximum(even, odd).reshape(bt, h // 2, half)

    x1 = x_ref[...]                                               # bf16
    y1 = conv3x3_relu(x1, w1_ref, b1_ref)                         # (Bt*H, W*16)
    p1 = maxpool2x2(y1, Bt, H, W2 * _C1).astype(jnp.bfloat16)     # (Bt,H2,W2*16)

    y2 = conv3x3_relu(p1, w2_ref, b2_ref)                         # (Bt*H2, W2*32)
    p2 = maxpool2x2(y2, Bt, H2, W3 * _C2).astype(jnp.bfloat16)    # (Bt,H3,W3*32)

    y3 = conv3x3_relu(p2, w3_ref, b3_ref)                         # (Bt*H3, W3*64)

    # GAP + Linear: spatial row-sum, then one bf16 matmul against the FC
    # weight pre-tiled over w and pre-scaled by 1/(H3*W3).
    feat = jnp.sum(y3.reshape(Bt, H3, W3 * _C3), axis=1)          # (Bt, W3*64)
    out = jnp.dot(feat.astype(jnp.bfloat16), wf_ref[...],
                  preferred_element_type=jnp.float32)
    o_ref[...] = (out + bf_ref[...]).astype(o_ref.dtype)


# ------------------------------ Pallas wrapper -------------------------------

def _pick_batch_block(B, H):
    """Largest batch block so M = Bt*H lands in the 256-512 range (MXU fill)
    while keeping >=1 grid step; multiples of 8 when the batch is split."""
    cap = max(1, 512 // H)
    if B <= cap:
        return B
    for bt in range(min(B, cap), 0, -1):
        if B % bt == 0 and bt % 8 == 0:
            return bt
    return B


@jax.jit
def cnn_forward(x_nchw, pallas_params):
    wb1, br1, wb2, br2, wb3, br3, wf_big, bf_row = pallas_params
    B, C, H, W = x_nchw.shape
    Cp = wb1.shape[0] // (3 * W)          # channel-padded Cin baked into wb1
    out_dim = wf_big.shape[1]

    # NCHW -> lane-dense channel-minor bf16 slab (B, H, W*Cp); channels are
    # zero-padded so conv1's per-dy K is 128-lane aligned.
    # TODO(synk): fold this repack into the kernel's x load for large inputs.
    xt = jnp.transpose(x_nchw, (0, 2, 3, 1))
    if Cp != C:
        xt = jnp.pad(xt, ((0, 0), (0, 0), (0, 0), (0, Cp - C)))
    x = xt.reshape(B, H, W * Cp).astype(jnp.bfloat16)

    Bt = _pick_batch_block(B, H)
    nb = B // Bt

    kernel = functools.partial(_cnn_fused_kernel, H=H, W=W)

    H2, W2, H3, W3 = H // 2, W // 2, H // 4, W // 4
    flops = 2 * B * (H * (3 * W * Cp) * (W * _C1)
                     + H2 * (3 * W2 * _C1) * (W2 * _C2)
                     + H3 * (3 * W3 * _C2) * (W3 * _C3)
                     + (W3 * _C3) * out_dim)
    bytes_accessed = int(
        x.size * 2 + (wb1.size + wb2.size + wb3.size + wf_big.size) * 2
        + (br1.size + br2.size + br3.size + bf_row.size) * 4
        + B * out_dim * 4)

    return pl.pallas_call(
        kernel,
        out_shape=jax.ShapeDtypeStruct((B, out_dim), jnp.float32),
        grid=(nb,),
        in_specs=[
            pl.BlockSpec((Bt, H, W * Cp), lambda b: (b, 0, 0)),
            pl.BlockSpec(wb1.shape, lambda b: (0, 0)),
            pl.BlockSpec(br1.shape, lambda b: (0, 0)),
            pl.BlockSpec(wb2.shape, lambda b: (0, 0)),
            pl.BlockSpec(br2.shape, lambda b: (0, 0)),
            pl.BlockSpec(wb3.shape, lambda b: (0, 0)),
            pl.BlockSpec(br3.shape, lambda b: (0, 0)),
            pl.BlockSpec(wf_big.shape, lambda b: (0, 0)),
            pl.BlockSpec(bf_row.shape, lambda b: (0, 0)),
        ],
        out_specs=pl.BlockSpec((Bt, out_dim), lambda b: (b, 0)),
        scratch_shapes=[pltpu.VMEM((Bt * H, 8 * W), jnp.float32)],
        compiler_params=pltpu.CompilerParams(
            dimension_semantics=("parallel",)),
        cost_estimate=pl.CostEstimate(flops=flops, transcendentals=0,
                                      bytes_accessed=bytes_accessed),
    )(x, wb1, br1, wb2, br2, wb3, br3, wf_big, bf_row)


# ------------------------------- parameters ---------------------------------

def init_params(input_channels, output_dim, key):
    """Standard-layout params: conv weights (3,3,Cin,Cout) HWIO, fc (64,out)."""
    ks = jax.random.split(key, 8)

    def conv_w(k, cin, cout):
        fan_in = 9 * cin
        return (jax.random.normal(k, (3, 3, cin, cout), jnp.float32)
                / jnp.sqrt(fan_in))

    w1 = conv_w(ks[0], input_channels, _C1)
    b1 = 0.01 * jax.random.normal(ks[1], (_C1,), jnp.float32)
    w2 = conv_w(ks[2], _C1, _C2)
    b2 = 0.01 * jax.random.normal(ks[3], (_C2,), jnp.float32)
    w3 = conv_w(ks[4], _C2, _C3)
    b3 = 0.01 * jax.random.normal(ks[5], (_C3,), jnp.float32)
    wf = jax.random.normal(ks[6], (_C3, output_dim), jnp.float32) / 8.0
    bf = 0.01 * jax.random.normal(ks[7], (output_dim,), jnp.float32)
    return (w1, b1, w2, b2, w3, b3, wf, bf)


def _pad_cin(cin, W):
    """Pad input channels so W*Cin is a multiple of 128 (lane alignment)."""
    for c in range(cin, cin + 129):
        if (W * c) % 128 == 0:
            return c
    return cin


def _banded_conv_weight(wconv, W, pooled, cin_pad=None):
    """Fold the dx taps + W-direction SAME padding of a 3x3 conv into a
    concat-K block-banded matrix of shape (3*W*Cinp, W*Cout); row block dy
    multiplies x[h+dy-1].  Output columns are (w, c), or (w%2, w//2, c) when
    `pooled` so the W-direction 2:1 max-pool is a max of the two lane halves."""
    wconv = np.asarray(wconv, np.float32)                   # (3, 3, Cin, Cout)
    Cin, Cout = wconv.shape[2], wconv.shape[3]
    Cp = Cin if cin_pad is None else cin_pad
    Wo = W // 2
    Bm = np.zeros((3, W * Cp, W * Cout), np.float32)
    for w in range(W):
        if pooled:
            col = (w % 2) * (Wo * Cout) + (w // 2) * Cout
        else:
            col = w * Cout
        for dy in range(3):
            for dx in range(3):
                wi = w + dx - 1
                if 0 <= wi < W:
                    Bm[dy, wi * Cp:wi * Cp + Cin, col:col + Cout] = wconv[dy, dx]
    return jnp.asarray(Bm.reshape(3 * W * Cp, W * Cout), dtype=jnp.bfloat16)


def prepare_pallas_params(params, H, W):
    """Host-side, once: kernel-side parameter layout."""
    assert H % 4 == 0 and W % 4 == 0, "need two 2x2 pools"
    w1, b1, w2, b2, w3, b3, wf, bf = params
    Cin = w1.shape[2]
    Cp = _pad_cin(Cin, W)
    H2, W2, H3, W3 = H // 2, W // 2, H // 4, W // 4
    wb1 = _banded_conv_weight(w1, W, pooled=True, cin_pad=Cp)
    wb2 = _banded_conv_weight(w2, W2, pooled=True)
    wb3 = _banded_conv_weight(w3, W3, pooled=False)
    br1 = jnp.tile(b1, (W,))[None].astype(jnp.float32)
    br2 = jnp.tile(b2, (W2,))[None].astype(jnp.float32)
    br3 = jnp.tile(b3, (W3,))[None].astype(jnp.float32)
    wf_big = (jnp.tile(wf, (W3, 1)) / float(H3 * W3)).astype(jnp.bfloat16)
    bf_row = bf[None].astype(jnp.float32)
    return (wb1, br1, wb2, br2, wb3, br3, wf_big, bf_row)


# ------------------------------ pure-JAX ref ---------------------------------

def reference_forward(x_nchw, params):
    w1, b1, w2, b2, w3, b3, wf, bf = params
    x = jnp.transpose(x_nchw, (0, 2, 3, 1))

    def conv(x, w, b):
        y = lax.conv_general_dilated(
            x, w, (1, 1), "SAME",
            dimension_numbers=("NHWC", "HWIO", "NHWC"),
            precision=lax.Precision.HIGHEST)
        return jax.nn.relu(y + b)

    def pool(x):
        return lax.reduce_window(x, -jnp.inf, lax.max,
                                 (1, 2, 2, 1), (1, 2, 2, 1), "VALID")

    x = pool(conv(x, w1, b1))
    x = pool(conv(x, w2, b2))
    x = conv(x, w3, b3)
    feat = jnp.mean(x, axis=(1, 2))
    return jnp.dot(feat, wf, precision=lax.Precision.HIGHEST) + bf


# ---------------------------------- main -------------------------------------

if __name__ == "__main__":
    B, C_IN, HW, OUT_DIM = 2, 4, 16, 8

    key = jax.random.PRNGKey(0)
    k_x, k_p = jax.random.split(key)
    x = jax.random.normal(k_x, (B, C_IN, HW, HW), jnp.float32)   # NCHW input
    params = init_params(C_IN, OUT_DIM, k_p)
    pparams = prepare_pallas_params(params, HW, HW)

    out = jax.block_until_ready(cnn_forward(x, pparams))
    assert out.shape == (B, OUT_DIM), out.shape

    ref = jax.block_until_ready(reference_forward(x, params))
    np.testing.assert_allclose(np.asarray(out), np.asarray(ref),
                               rtol=5e-2, atol=5e-2)

    print("KERNEL_OK")
</pallas_src>

<mosaic_0001>
module attributes {stable_mosaic.version = 11 : i64} {
  func.func @_cnn_fused_kernel(%arg0: i32, %arg1: memref<2x16x128xbf16, #tpu.memory_space<vmem>>, %arg2: memref<384x256xbf16, #tpu.memory_space<vmem>>, %arg3: memref<1x256xf32, #tpu.memory_space<vmem>>, %arg4: memref<384x256xbf16, #tpu.memory_space<vmem>>, %arg5: memref<1x256xf32, #tpu.memory_space<vmem>>, %arg6: memref<384x256xbf16, #tpu.memory_space<vmem>>, %arg7: memref<1x256xf32, #tpu.memory_space<vmem>>, %arg8: memref<256x8xbf16, #tpu.memory_space<vmem>>, %arg9: memref<1x8xf32, #tpu.memory_space<vmem>>, %arg10: memref<2x8xf32, #tpu.memory_space<vmem>>, %arg11: memref<32x128xf32, #tpu.memory_space<vmem>>) attributes {dimension_semantics = [#tpu.dimension_semantics<parallel>], iteration_bounds = array<i64: 1>, scalar_prefetch = 0 : i64, scratch_operands = 1 : i64, tpu.core_type = #tpu.core_type<tc>, window_params = [{transform_indices = @transform_0, window_bounds = array<i64: 2, 16, 128>}, {pipeline_mode = #tpu.pipeline_mode<synchronous>, transform_indices = @transform_1, window_bounds = array<i64: 384, 256>}, {pipeline_mode = #tpu.pipeline_mode<synchronous>, transform_indices = @transform_2, window_bounds = array<i64: 1, 256>}, {pipeline_mode = #tpu.pipeline_mode<synchronous>, transform_indices = @transform_3, window_bounds = array<i64: 384, 256>}, {pipeline_mode = #tpu.pipeline_mode<synchronous>, transform_indices = @transform_4, window_bounds = array<i64: 1, 256>}, {pipeline_mode = #tpu.pipeline_mode<synchronous>, transform_indices = @transform_5, window_bounds = array<i64: 384, 256>}, {pipeline_mode = #tpu.pipeline_mode<synchronous>, transform_indices = @transform_6, window_bounds = array<i64: 1, 256>}, {pipeline_mode = #tpu.pipeline_mode<synchronous>, transform_indices = @transform_7, window_bounds = array<i64: 256, 8>}, {pipeline_mode = #tpu.pipeline_mode<synchronous>, transform_indices = @transform_8, window_bounds = array<i64: 1, 8>}, {transform_indices = @transform_9, window_bounds = array<i64: 2, 8>}]} {
    %c0 = arith.constant 0 : index
    %c0_0 = arith.constant 0 : index
    %c0_1 = arith.constant 0 : index
    %0 = vector.load %arg1[%c0, %c0_0, %c0_1] : memref<2x16x128xbf16, #tpu.memory_space<vmem>>, vector<2x16x128xbf16>
    %cst = arith.constant 0.000000e+00 : bf16
    %1 = vector.broadcast %cst : bf16 to vector<2x1x128xbf16>
    %2 = vector.extract_strided_slice %0 {offsets = [0, 0, 0], sizes = [2, 15, 128], strides = [1, 1, 1]} : vector<2x16x128xbf16> to vector<2x15x128xbf16>
    %3 = tpu.concatenate %1, %2 in 1 : vector<2x1x128xbf16>, vector<2x15x128xbf16> -> vector<2x16x128xbf16>
    %4 = vector.extract_strided_slice %0 {offsets = [0, 1, 0], sizes = [2, 15, 128], strides = [1, 1, 1]} : vector<2x16x128xbf16> to vector<2x15x128xbf16>
    %5 = tpu.concatenate %4, %1 in 1 : vector<2x15x128xbf16>, vector<2x1x128xbf16> -> vector<2x16x128xbf16>
    %6 = tpu.concatenate %3, %0, %5 in 2 : vector<2x16x128xbf16>, vector<2x16x128xbf16>, vector<2x16x128xbf16> -> vector<2x16x384xbf16>
    %7 = vector.shape_cast %6 : vector<2x16x384xbf16> to vector<32x384xbf16>
    %c0_2 = arith.constant 0 : index
    %c0_3 = arith.constant 0 : index
    %8 = vector.load %arg2[%c0_2, %c0_3] : memref<384x256xbf16, #tpu.memory_space<vmem>>, vector<384x256xbf16>
    %cst_4 = arith.constant dense<0.000000e+00> : vector<32x256xf32>
    %9 = tpu.matmul %7, %8, %cst_4 {dimension_numbers = #tpu.dot_dimension_numbers<[1], [0], [0], [1], [0, 0, 1, 1], [], []>} : vector<32x384xbf16>, vector<384x256xbf16>, vector<32x256xf32> -> vector<32x256xf32>
    %c0_5 = arith.constant 0 : index
    %c0_6 = arith.constant 0 : index
    %10 = vector.load %arg3[%c0_5, %c0_6] : memref<1x256xf32, #tpu.memory_space<vmem>>, vector<1x256xf32>
    %11 = vector.broadcast %10 : vector<1x256xf32> to vector<32x256xf32>
    %12 = arith.addf %9, %11 : vector<32x256xf32>
    %cst_7 = arith.constant 0.000000e+00 : f32
    %13 = vector.broadcast %cst_7 : f32 to vector<32x256xf32>
    %14 = arith.maximumf %12, %13 : vector<32x256xf32>
    %15 = vector.extract_strided_slice %14 {offsets = [0, 0], sizes = [32, 128], strides = [1, 1]} : vector<32x256xf32> to vector<32x128xf32>
    %16 = vector.extract_strided_slice %14 {offsets = [0, 128], sizes = [32, 128], strides = [1, 1]} : vector<32x256xf32> to vector<32x128xf32>
    %17 = arith.maximumf %15, %16 : vector<32x128xf32>
    %c0_8 = arith.constant 0 : index
    %c0_9 = arith.constant 0 : index
    %18 = vector.load %arg11[%c0_8, %c0_9] : memref<32x128xf32, #tpu.memory_space<vmem>>, vector<32x128xf32>
    tpu.vector_store %arg11[%c0_8, %c0_9], %17 {strides = array<i32>} : memref<32x128xf32, #tpu.memory_space<vmem>>, vector<32x128xf32>,
    %c0_10 = arith.constant 0 : index
    %c0_11 = arith.constant 0 : index
    %19 = tpu.strided_load %arg11[%c0_10, %c0_11] {strides = array<i32: 2, 1>} : memref<32x128xf32, #tpu.memory_space<vmem>>, vector<16x128xf32>
    %c1 = arith.constant 1 : index
    %c0_12 = arith.constant 0 : index
    %20 = tpu.strided_load %arg11[%c1, %c0_12] {strides = array<i32: 2, 1>} : memref<32x128xf32, #tpu.memory_space<vmem>>, vector<16x128xf32>
    %21 = arith.maximumf %19, %20 : vector<16x128xf32>
    %22 = vector.shape_cast %21 : vector<16x128xf32> to vector<2x8x128xf32>
    %23 = arith.truncf %22 : vector<2x8x128xf32> to vector<2x8x128xbf16>
    %cst_13 = arith.constant 0.000000e+00 : bf16
    %24 = vector.broadcast %cst_13 : bf16 to vector<2x1x128xbf16>
    %25 = vector.extract_strided_slice %23 {offsets = [0, 0, 0], sizes = [2, 7, 128], strides = [1, 1, 1]} : vector<2x8x128xbf16> to vector<2x7x128xbf16>
    %26 = tpu.concatenate %24, %25 in 1 : vector<2x1x128xbf16>, vector<2x7x128xbf16> -> vector<2x8x128xbf16>
    %27 = vector.extract_strided_slice %23 {offsets = [0, 1, 0], sizes = [2, 7, 128], strides = [1, 1, 1]} : vector<2x8x128xbf16> to vector<2x7x128xbf16>
    %28 = tpu.concatenate %27, %24 in 1 : vector<2x7x128xbf16>, vector<2x1x128xbf16> -> vector<2x8x128xbf16>
    %29 = tpu.concatenate %26, %23, %28 in 2 : vector<2x8x128xbf16>, vector<2x8x128xbf16>, vector<2x8x128xbf16> -> vector<2x8x384xbf16>
    %30 = vector.shape_cast %29 : vector<2x8x384xbf16> to vector<16x384xbf16>
    %c0_14 = arith.constant 0 : index
    %c0_15 = arith.constant 0 : index
    %31 = vector.load %arg4[%c0_14, %c0_15] : memref<384x256xbf16, #tpu.memory_space<vmem>>, vector<384x256xbf16>
    %cst_16 = arith.constant dense<0.000000e+00> : vector<16x256xf32>
    %32 = tpu.matmul %30, %31, %cst_16 {dimension_numbers = #tpu.dot_dimension_numbers<[1], [0], [0], [1], [0, 0, 1, 1], [], []>} : vector<16x384xbf16>, vector<384x256xbf16>, vector<16x256xf32> -> vector<16x256xf32>
    %c0_17 = arith.constant 0 : index
    %c0_18 = arith.constant 0 : index
    %33 = vector.load %arg5[%c0_17, %c0_18] : memref<1x256xf32, #tpu.memory_space<vmem>>, vector<1x256xf32>
    %34 = vector.broadcast %33 : vector<1x256xf32> to vector<16x256xf32>
    %35 = arith.addf %32, %34 : vector<16x256xf32>
    %cst_19 = arith.constant 0.000000e+00 : f32
    %36 = vector.broadcast %cst_19 : f32 to vector<16x256xf32>
    %37 = arith.maximumf %35, %36 : vector<16x256xf32>
    %38 = vector.extract_strided_slice %37 {offsets = [0, 0], sizes = [16, 128], strides = [1, 1]} : vector<16x256xf32> to vector<16x128xf32>
    %39 = vector.extract_strided_slice %37 {offsets = [0, 128], sizes = [16, 128], strides = [1, 1]} : vector<16x256xf32> to vector<16x128xf32>
    %40 = arith.maximumf %38, %39 : vector<16x128xf32>
    %c0_20 = arith.constant 0 : index
    %c0_21 = arith.constant 0 : index
    %41 = vector.load %arg11[%c0_20, %c0_21] : memref<32x128xf32, #tpu.memory_space<vmem>>, vector<16x128xf32>
    tpu.vector_store %arg11[%c0_20, %c0_21], %40 {strides = array<i32>} : memref<32x128xf32, #tpu.memory_space<vmem>>, vector<16x128xf32>,
    %c0_22 = arith.constant 0 : index
    %c0_23 = arith.constant 0 : index
    %42 = tpu.strided_load %arg11[%c0_22, %c0_23] {strides = array<i32: 2, 1>} : memref<32x128xf32, #tpu.memory_space<vmem>>, vector<8x128xf32>
    %c1_24 = arith.constant 1 : index
    %c0_25 = arith.constant 0 : index
    %43 = tpu.strided_load %arg11[%c1_24, %c0_25] {strides = array<i32: 2, 1>} : memref<32x128xf32, #tpu.memory_space<vmem>>, vector<8x128xf32>
    %44 = arith.maximumf %42, %43 : vector<8x128xf32>
    %45 = vector.shape_cast %44 : vector<8x128xf32> to vector<2x4x128xf32>
    %46 = arith.truncf %45 : vector<2x4x128xf32> to vector<2x4x128xbf16>
    %cst_26 = arith.constant 0.000000e+00 : bf16
    %47 = vector.broadcast %cst_26 : bf16 to vector<2x1x128xbf16>
    %48 = vector.extract_strided_slice %46 {offsets = [0, 0, 0], sizes = [2, 3, 128], strides = [1, 1, 1]} : vector<2x4x128xbf16> to vector<2x3x128xbf16>
    %49 = tpu.concatenate %47, %48 in 1 : vector<2x1x128xbf16>, vector<2x3x128xbf16> -> vector<2x4x128xbf16>
    %50 = vector.extract_strided_slice %46 {offsets = [0, 1, 0], sizes = [2, 3, 128], strides = [1, 1, 1]} : vector<2x4x128xbf16> to vector<2x3x128xbf16>
    %51 = tpu.concatenate %50, %47 in 1 : vector<2x3x128xbf16>, vector<2x1x128xbf16> -> vector<2x4x128xbf16>
    %52 = tpu.concatenate %49, %46, %51 in 2 : vector<2x4x128xbf16>, vector<2x4x128xbf16>, vector<2x4x128xbf16> -> vector<2x4x384xbf16>
    %53 = vector.shape_cast %52 : vector<2x4x384xbf16> to vector<8x384xbf16>
    %c0_27 = arith.constant 0 : index
    %c0_28 = arith.constant 0 : index
    %54 = vector.load %arg6[%c0_27, %c0_28] : memref<384x256xbf16, #tpu.memory_space<vmem>>, vector<384x256xbf16>
    %cst_29 = arith.constant dense<0.000000e+00> : vector<8x256xf32>
    %55 = tpu.matmul %53, %54, %cst_29 {dimension_numbers = #tpu.dot_dimension_numbers<[1], [0], [0], [1], [0, 0, 1, 1], [], []>} : vector<8x384xbf16>, vector<384x256xbf16>, vector<8x256xf32> -> vector<8x256xf32>
    %c0_30 = arith.constant 0 : index
    %c0_31 = arith.constant 0 : index
    %56 = vector.load %arg7[%c0_30, %c0_31] : memref<1x256xf32, #tpu.memory_space<vmem>>, vector<1x256xf32>
    %57 = vector.broadcast %56 : vector<1x256xf32> to vector<8x256xf32>
    %58 = arith.addf %55, %57 : vector<8x256xf32>
    %cst_32 = arith.constant 0.000000e+00 : f32
    %59 = vector.broadcast %cst_32 : f32 to vector<8x256xf32>
    %60 = arith.maximumf %58, %59 : vector<8x256xf32>
    %61 = vector.shape_cast %60 : vector<8x256xf32> to vector<2x4x256xf32>
    %cst_33 = arith.constant dense<0.000000e+00> : vector<2x256xf32>
    %62 = vector.multi_reduction <add>, %61, %cst_33 [1] : vector<2x4x256xf32> to vector<2x256xf32>
    %63 = arith.truncf %62 : vector<2x256xf32> to vector<2x256xbf16>
    %c0_34 = arith.constant 0 : index
    %c0_35 = arith.constant 0 : index
    %64 = vector.load %arg8[%c0_34, %c0_35] : memref<256x8xbf16, #tpu.memory_space<vmem>>, vector<256x8xbf16>
    %cst_36 = arith.constant dense<0.000000e+00> : vector<2x8xf32>
    %65 = tpu.matmul %63, %64, %cst_36 {dimension_numbers = #tpu.dot_dimension_numbers<[1], [0], [0], [1], [0, 0, 1, 1], [], []>} : vector<2x256xbf16>, vector<256x8xbf16>, vector<2x8xf32> -> vector<2x8xf32>
    %c0_37 = arith.constant 0 : index
    %c0_38 = arith.constant 0 : index
    %66 = vector.load %arg9[%c0_37, %c0_38] : memref<1x8xf32, #tpu.memory_space<vmem>>, vector<1x8xf32>
    %67 = vector.broadcast %66 : vector<1x8xf32> to vector<2x8xf32>
    %68 = arith.addf %65, %67 : vector<2x8xf32>
    %c0_39 = arith.constant 0 : index
    %c0_40 = arith.constant 0 : index
    %69 = vector.load %arg10[%c0_39, %c0_40] : memref<2x8xf32, #tpu.memory_space<vmem>>, vector<2x8xf32>
    tpu.vector_store %arg10[%c0_39, %c0_40], %68 {strides = array<i32>} : memref<2x8xf32, #tpu.memory_space<vmem>>, vector<2x8xf32>,
    return
  }
  func.func @transform_0(%arg0: i32) -> (i32, i32, i32) {
    %c0_i32 = arith.constant 0 : i32
    %c0_i32_0 = arith.constant 0 : i32
    %c0_i32_1 = arith.constant 0 : i32
    return %arg0, %c0_i32, %c0_i32_0 : i32, i32, i32
  }
  func.func @transform_1(%arg0: i32) -> (i32, i32) {
    %c0_i32 = arith.constant 0 : i32
    %c0_i32_0 = arith.constant 0 : i32
    %c0_i32_1 = arith.constant 0 : i32
    return %c0_i32, %c0_i32_0 : i32, i32
  }
  func.func @transform_2(%arg0: i32) -> (i32, i32) {
    %c0_i32 = arith.constant 0 : i32
    %c0_i32_0 = arith.constant 0 : i32
    %c0_i32_1 = arith.constant 0 : i32
    return %c0_i32, %c0_i32_0 : i32, i32
  }
  func.func @transform_3(%arg0: i32) -> (i32, i32) {
    %c0_i32 = arith.constant 0 : i32
    %c0_i32_0 = arith.constant 0 : i32
    %c0_i32_1 = arith.constant 0 : i32
    return %c0_i32, %c0_i32_0 : i32, i32
  }
  func.func @transform_4(%arg0: i32) -> (i32, i32) {
    %c0_i32 = arith.constant 0 : i32
    %c0_i32_0 = arith.constant 0 : i32
    %c0_i32_1 = arith.constant 0 : i32
    return %c0_i32, %c0_i32_0 : i32, i32
  }
  func.func @transform_5(%arg0: i32) -> (i32, i32) {
    %c0_i32 = arith.constant 0 : i32
    %c0_i32_0 = arith.constant 0 : i32
    %c0_i32_1 = arith.constant 0 : i32
    return %c0_i32, %c0_i32_0 : i32, i32
  }
  func.func @transform_6(%arg0: i32) -> (i32, i32) {
    %c0_i32 = arith.constant 0 : i32
    %c0_i32_0 = arith.constant 0 : i32
    %c0_i32_1 = arith.constant 0 : i32
    return %c0_i32, %c0_i32_0 : i32, i32
  }
  func.func @transform_7(%arg0: i32) -> (i32, i32) {
    %c0_i32 = arith.constant 0 : i32
    %c0_i32_0 = arith.constant 0 : i32
    %c0_i32_1 = arith.constant 0 : i32
    return %c0_i32, %c0_i32_0 : i32, i32
  }
  func.func @transform_8(%arg0: i32) -> (i32, i32) {
    %c0_i32 = arith.constant 0 : i32
    %c0_i32_0 = arith.constant 0 : i32
    %c0_i32_1 = arith.constant 0 : i32
    return %c0_i32, %c0_i32_0 : i32, i32
  }
  func.func @transform_9(%arg0: i32) -> (i32, i32) {
    %c0_i32 = arith.constant 0 : i32
    %c0_i32_0 = arith.constant 0 : i32
    return %arg0, %c0_i32 : i32, i32
  }
}

</mosaic_0001>

<bundles_post_ra>
// kernel: cnn_forward.1
= control target key start
LH: loop header
LB: loop body
LE: loop exit
PB: predicated region body
PF: predicated region fallthrough
CT: control target
= control target key end

     0   :  { %14 = vsyncpa [#allocation4], 0  ;;  %s3337_s0 = inlined_call_operand.vmem [shape: bf16[2,16,128], index: 0, kind: input, shape index: {}]   ;;  %s3338_s1 = inlined_call_operand.vmem [shape: bf16[384,256], index: 1, kind: input, shape index: {}]   ;;  %s3339_s2 = inlined_call_operand.vmem [shape: f32[1,256], index: 2, kind: input, shape index: {}]   ;;  %s3340_s3 = inlined_call_operand.vmem [shape: bf16[384,256], index: 3, kind: input, shape index: {}]   ;;  %s3341_s4 = inlined_call_operand.vmem [shape: f32[1,256], index: 4, kind: input, shape index: {}]   ;;  %s3342_s5 = inlined_call_operand.hbm [shape: bf16[384,256], index: 5, kind: input, shape index: {}]   ;;  %s3343_s6 = inlined_call_operand.vmem [shape: f32[1,256], index: 6, kind: input, shape index: {}]   ;;  %s3344_s7 = inlined_call_operand.vmem [shape: bf16[256,8], index: 7, kind: input, shape index: {}]   ;;  %s3345_s8 = inlined_call_operand.vmem [shape: f32[1,8], index: 8, kind: input, shape index: {}]   ;;  %s3346_s9 = inlined_call_operand.hbm [shape: f32[2,8], index: 9, kind: output, shape index: {}]  }
   0x1   :  { %15 = vsyncpa [#allocation5], 0  ;;  %s30_s11 = sshll.u32 %s3342_s5, 4  ;;  %s2520_s12 = smov [#allocation3]   ;;  %s31_s11 = int_to_ptr.hbm [resolvable:$true] %s30_s11 }
   0x2   :  { %s32_s13 = sshll.u32 %s2520_s12, 4  ;;  %s2521_s14 = smov 128   ;;  %s33_s13 = int_to_ptr.vmem [resolvable:$true] %s32_s13 }
   0x3   :  { %s2522_s15 = smov 8  }
   0x4   :  { %38 = dma.hbm_to_vmem [thread:$0]  %s31_s11, 6144, %s33_s13, [#allocation4], %s2521_s14, %s2521_s14, %s2522_s15  }
   0x5   :  { %2516 = dma.done.wait [#allocation4], 6144  }
   0x6   :  { %2517 = vsyncadd [#allocation4], 4294961152  ;;  %v1719_v0 = vld [vmem:[%s3338_s1 + $0x70] sm:$0xf]  ;;  %v2318_v1 = vld [vmem:[%s3338_s1 + $0x74] sm:$0xf0] }
   0x7   :  { %v1783_v2 = vld [vmem:[%s3338_s1 + $0xf0] sm:$0xf]  ;;  %v1720_v3 = vor.u32 %v2318_v1, %v1719_v0  ;;  %v2334_v4 = vld [vmem:[%s3338_s1 + $0xf4] sm:$0xf0]  ;;  %v1711_v9 = vld [vmem:[%s3338_s1 + $0x60] sm:$0xf] }
   0x8   :  { %v1847_v5 = vld [vmem:[%s3338_s1 + $0x170] sm:$0xf]  ;;  %v2350_v6 = vld [vmem:[%s3338_s1 + $0x174] sm:$0xf0]  ;;  %v1784_v7 = vor.u32 %v2334_v4, %v1783_v2  ;;  %v2316_v10 = vld [vmem:[%s3338_s1 + $0x64] sm:$0xf0] }
   0x9   :  { %v1848_v8 = vor.u32 %v2350_v6, %v1847_v5  ;;  %v1775_v11 = vld [vmem:[%s3338_s1 + $0xe0] sm:$0xf]  ;;  %392 = vmatpush.bf16.msra.mxu0 %v1720_v3  ;;  %v1712_v12 = vor.u32 %v2316_v10, %v1711_v9  ;;  %v2332_v13 = vld [vmem:[%s3338_s1 + $0xe4] sm:$0xf0]  ;;  %v1703_v18 = vld [vmem:[%s3338_s1 + $0x50] sm:$0xf] }
   0xa   :  { %v1839_v14 = vld [vmem:[%s3338_s1 + $0x160] sm:$0xf]  ;;  %v2348_v15 = vld [vmem:[%s3338_s1 + $0x164] sm:$0xf0]  ;;  %411 = vmatpush.bf16.msra.mxu1 %v1784_v7  ;;  %v1776_v16 = vor.u32 %v2332_v13, %v1775_v11  ;;  %v2314_v19 = vld [vmem:[%s3338_s1 + $0x54] sm:$0xf0] }
   0xb   :  { %430 = vmatpush.bf16.msra.mxu2 %v1848_v8  ;;  %v1840_v17 = vor.u32 %v2348_v15, %v1839_v14  ;;  %v1767_v20 = vld [vmem:[%s3338_s1 + $0xd0] sm:$0xf]  ;;  %v2330_v21 = vld [vmem:[%s3338_s1 + $0xd4] sm:$0xf0]  ;;  %v1704_v24 = vor.u32 %v2314_v19, %v1703_v18  ;;  %v1695_v27 = vld [vmem:[%s3338_s1 + $0x40] sm:$0xf] }
   0xc   :  { %v1831_v22 = vld [vmem:[%s3338_s1 + $0x150] sm:$0xf]  ;;  %v2346_v23 = vld [vmem:[%s3338_s1 + $0x154] sm:$0xf0]  ;;  %v1768_v25 = vor.u32 %v2330_v21, %v1767_v20  ;;  %v2312_v28 = vld [vmem:[%s3338_s1 + $0x44] sm:$0xf0] }
   0xd   :  { %393 = vmatpush.bf16.msra.mxu0 %v1712_v12  ;;  %v1832_v26 = vor.u32 %v2346_v23, %v1831_v22  ;;  %v1759_v29 = vld [vmem:[%s3338_s1 + $0xc0] sm:$0xf]  ;;  %v2328_v30 = vld [vmem:[%s3338_s1 + $0xc4] sm:$0xf0]  ;;  %v2317_v33 = vld [vmem:[%s3338_s1 + $0x74] sm:$0xf]  ;;  %v1696_v35 = vor.u32 %v2312_v28, %v1695_v27 }
   0xe   :  { %412 = vmatpush.bf16.msra.mxu1 %v1776_v16  ;;  %v1823_v31 = vld [vmem:[%s3338_s1 + $0x140] sm:$0xf]  ;;  %v2344_v32 = vld [vmem:[%s3338_s1 + $0x144] sm:$0xf0]  ;;  %v1721_v34 = vld [vmem:[%s3338_s1 + $0x78] sm:$0xf0]  ;;  %v1760_v39 = vor.u32 %v2328_v30, %v1759_v29 }
   0xf   :  { %431 = vmatpush.bf16.msra.mxu2 %v1840_v17  ;;  %v1687_v36 = vld [vmem:[%s3338_s1 + $0x30] sm:$0xf]  ;;  %v2310_v37 = vld [vmem:[%s3338_s1 + $0x34] sm:$0xf0]  ;;  %v1724_v38 = vor.u32 %v2317_v33, %v1721_v34  ;;  %v1824_v40 = vor.u32 %v2344_v32, %v1823_v31  ;;  %v2315_v43 = vld [vmem:[%s3338_s1 + $0x64] sm:$0xf] }
  0x10   :  { %v1751_v41 = vld [vmem:[%s3338_s1 + $0xb0] sm:$0xf]  ;;  %v2326_v42 = vld [vmem:[%s3338_s1 + $0xb4] sm:$0xf0]  ;;  %v1713_v46 = vld [vmem:[%s3338_s1 + $0x68] sm:$0xf0]  ;;  %v1688_v48 = vor.u32 %v2310_v37, %v1687_v36 }
  0x11   :  { %394 = vmatpush.bf16.msra.mxu0 %v1704_v24  ;;  %v1815_v44 = vld [vmem:[%s3338_s1 + $0x130] sm:$0xf]  ;;  %v2342_v45 = vld [vmem:[%s3338_s1 + $0x134] sm:$0xf0]  ;;  %449 = vmatpush.bf16.msra.mxu3 %v1724_v38  ;;  %v1716_v47 = vor.u32 %v2315_v43, %v1713_v46  ;;  %v2313_v49 = vld [vmem:[%s3338_s1 + $0x54] sm:$0xf]  ;;  %v1752_v51 = vor.u32 %v2326_v42, %v1751_v41 }
  0x12   :  { %413 = vmatpush.bf16.msra.mxu1 %v1768_v25  ;;  %v1705_v50 = vld [vmem:[%s3338_s1 + $0x58] sm:$0xf0]  ;;  %v1816_v52 = vor.u32 %v2342_v45, %v1815_v44  ;;  %v1679_v53 = vld [vmem:[%s3338_s1 + $0x20] sm:$0xf]  ;;  %v2308_v54 = vld [vmem:[%s3338_s1 + $0x24] sm:$0xf0] }
  0x13   :  { %432 = vmatpush.bf16.msra.mxu2 %v1832_v26  ;;  %v1743_v55 = vld [vmem:[%s3338_s1 + $0xa0] sm:$0xf]  ;;  %v2324_v56 = vld [vmem:[%s3338_s1 + $0xa4] sm:$0xf0]  ;;  %v1708_v59 = vor.u32 %v2313_v49, %v1705_v50  ;;  %v2311_v60 = vld [vmem:[%s3338_s1 + $0x44] sm:$0xf]  ;;  %v1680_v63 = vor.u32 %v2308_v54, %v1679_v53 }
  0x14   :  { %v1807_v57 = vld [vmem:[%s3338_s1 + $0x120] sm:$0xf]  ;;  %v2340_v58 = vld [vmem:[%s3338_s1 + $0x124] sm:$0xf0]  ;;  %v1697_v61 = vld [vmem:[%s3338_s1 + $0x48] sm:$0xf0]  ;;  %v1744_v1 = vor.u32 %v2324_v56, %v1743_v55 }
  0x15   :  { %395 = vmatpush.bf16.msra.mxu0 %v1696_v35  ;;  %450 = vmatpush.bf16.msra.mxu3 %v1716_v47  ;;  %v2712_v62 = vld [vmem:[%s3337_s0] sm:$0xff]  ;;  %v1671_v0 = vld [vmem:[%s3338_s1 + $0x10] sm:$0xf]  ;;  %v1808_v2 = vor.u32 %v2340_v58, %v1807_v57  ;;  %v2306_v3 = vld [vmem:[%s3338_s1 + $0x14] sm:$0xf0]  ;;  %v1700_v10 = vor.u32 %v2311_v60, %v1697_v61  ;;  %vm80_vm1 = vcmask 1040384  }
  0x16   :  { %414 = vmatpush.bf16.msra.mxu1 %v1760_v39  ;;  %v1735_v4 = vld [vmem:[%s3338_s1 + $0x90] sm:$0xf]  ;;  %v65_v5 = vshrl.u32 %v2712_v62, 16  ;;  %v68_v6 = vshll.u32 %v2712_v62, 16  ;;  %v2322_v7 = vld [vmem:[%s3338_s1 + $0x94] sm:$0xf0]  ;;  %v1672_v15 = vor.u32 %v2306_v3, %v1671_v0 }
  0x17   :  { %433 = vmatpush.bf16.msra.mxu2 %v1824_v40  ;;  %v1799_v8 = vld [vmem:[%s3338_s1 + $0x110] sm:$0xf]  ;;  %v2338_v9 = vld [vmem:[%s3338_s1 + $0x114] sm:$0xf0]  ;;  %v1663_v11 = vld [vmem:[%s3338_s1] sm:$0xf]  ;;  %v1736_v20 = vor.u32 %v2322_v7, %v1735_v4 }
  0x18   :  { %v2304_v12 = vld [vmem:[%s3338_s1 + $0x4] sm:$0xf0]  ;;  %v2309_v13 = vld [vmem:[%s3338_s1 + $0x34] sm:$0xf]  ;;  %v1689_v14 = vld [vmem:[%s3338_s1 + $0x38] sm:$0xf0]  ;;  %v1800_v21 = vor.u32 %v2338_v9, %v1799_v8 }
  0x19   :  { %396 = vmatpush.bf16.msra.mxu0 %v1688_v48  ;;  %451 = vmatpush.bf16.msra.mxu3 %v1708_v59  ;;  %v1727_v16 = vld [vmem:[%s3338_s1 + $0x80] sm:$0xf]  ;;  %v2320_v17 = vld [vmem:[%s3338_s1 + $0x84] sm:$0xf0]  ;;  %v67_v19 = vrot.slane %v65_v5, 7  ;;  %v85_v23 = vrot.slane %v68_v6, 1  ;;  %v1692_v25 = vor.u32 %v2309_v13, %v1689_v14  ;;  %v1664_v29 = vor.u32 %v2304_v12, %v1663_v11 }
  0x1a   :  { %415 = vmatpush.bf16.msra.mxu1 %v1752_v51  ;;  %v1791_v18 = vld [vmem:[%s3338_s1 + $0x100] sm:$0xf]  ;;  %v2336_v22 = vld [vmem:[%s3338_s1 + $0x104] sm:$0xf0]  ;;  %vm81_vm0 = vsmask.f32 256  ;;  %v1728_v33 = vor.u32 %v2320_v17, %v1727_v16 }
  0x1b   :  { %434 = vmatpush.bf16.msra.mxu2 %v1816_v52  ;;  %vm91_vm2 = vcmask 1047552   ;;  %vm92_vm3 = vsmask.f32 7424  ;;  %v2333_v24 = vld [vmem:[%s3338_s1 + $0xf4] sm:$0xf]  ;;  %v70_v30 = vor.u32 %v68_v6, %v67_v19  ;;  %v1792_v34 = vor.u32 %v2336_v22, %v1791_v18  ;;  %vm2778_vm4 = vmand %vm80_vm1, %vm81_vm0  ;;  %v2794_v41 = vld [vmem:[%s3337_s0 + $0x8] sm:$0xff] }
  0x1c   :  { %v1785_v26 = vld [vmem:[%s3338_s1 + $0xf8] sm:$0xf0]  ;;  %v2349_v27 = vld [vmem:[%s3338_s1 + $0x174] sm:$0xf]  ;;  %v2307_v31 = vld [vmem:[%s3338_s1 + $0x24] sm:$0xf]  ;;  %v86_v36 = vor.u32 %v85_v23, %v65_v5 }
  0x1d   :  { %397 = vmatpush.bf16.msra.mxu0 %v1680_v63  ;;  %452 = vmatpush.bf16.msra.mxu3 %v1700_v10  ;;  %v1849_v28 = vld [vmem:[%s3338_s1 + $0x178] sm:$0xf0]  ;;  %v1681_v32 = vld [vmem:[%s3338_s1 + $0x28] sm:$0xf0]  ;;  %vm2784_vm5 = vmand %vm91_vm2, %vm92_vm3  ;;  %v1788_v38 = vor.u32 %v2333_v24, %v1785_v26  ;;  %v83_v46 = vsel %vm2778_vm4, 0, %v70_v30  ;;  %v72_v53 = vshrl.u32 %v2794_v41, 16 }
  0x1e   :  { %416 = vmatpush.bf16.msra.mxu1 %v1744_v1  ;;  %v1852_v39 = vor.u32 %v2349_v27, %v1849_v28  ;;  %v2331_v40 = vld [vmem:[%s3338_s1 + $0xe4] sm:$0xf]  ;;  %v1777_v42 = vld [vmem:[%s3338_s1 + $0xe8] sm:$0xf0]  ;;  %v1684_v43 = vor.u32 %v2307_v31, %v1681_v32  ;;  %v2305_v47 = vld [vmem:[%s3338_s1 + $0x14] sm:$0xf] }
  0x1f   :  { %435 = vmatpush.bf16.msra.mxu2 %v1808_v2  ;;  %v2347_v44 = vld [vmem:[%s3338_s1 + $0x164] sm:$0xf]  ;;  %v1841_v45 = vld [vmem:[%s3338_s1 + $0x168] sm:$0xf0]  ;;  %v1673_v48 = vld [vmem:[%s3338_s1 + $0x18] sm:$0xf0]  ;;  %v1780_v50 = vor.u32 %v2331_v40, %v1777_v42 }
  0x20   :  { %v2815_v49 = vsel %vm2784_vm5, %v86_v36, 0  ;;  %v1844_v51 = vor.u32 %v2347_v44, %v1841_v45  ;;  %v2329_v52 = vld [vmem:[%s3338_s1 + $0xd4] sm:$0xf]  ;;  %v1769_v54 = vld [vmem:[%s3338_s1 + $0xd8] sm:$0xf0]  ;;  %v1676_v55 = vor.u32 %v2305_v47, %v1673_v48  ;;  %v75_v60 = vshll.u32 %v2794_v41, 16 }
  0x21   :  { %398 = vmatpush.bf16.msra.mxu0 %v1672_v15  ;;  %453 = vmatpush.bf16.msra.mxu3 %v1692_v25  ;;  %v2345_v56 = vld [vmem:[%s3338_s1 + $0x154] sm:$0xf]  ;;  %v1833_v57 = vld [vmem:[%s3338_s1 + $0x158] sm:$0xf0]  ;;  %v2303_v58 = vld [vmem:[%s3338_s1 + $0x4] sm:$0xf]  ;;  %v1772_v61 = vor.u32 %v2329_v52, %v1769_v54 }
  0x22   :  { %417 = vmatpush.bf16.msra.mxu1 %v1736_v20  ;;  %v1665_v59 = vld [vmem:[%s3338_s1 + $0x8] sm:$0xf0]  ;;  %v1836_v63 = vor.u32 %v2345_v56, %v1833_v57  ;;  %v2327_v0 = vld [vmem:[%s3338_s1 + $0xc4] sm:$0xf]  ;;  %v74_v5 = vrot.slane %v72_v53, 7  ;;  %v87_v6 = vrot.slane %v75_v60, 1 }
  0x23   :  { %436 = vmatpush.bf16.msra.mxu2 %v1800_v21  ;;  %v1761_v1 = vld [vmem:[%s3338_s1 + $0xc8] sm:$0xf0]  ;;  %v1668_v2 = vor.u32 %v2303_v58, %v1665_v59  ;;  %v2343_v3 = vld [vmem:[%s3338_s1 + $0x144] sm:$0xf]  ;;  %v2325_v9 = vld [vmem:[%s3338_s1 + $0xb4] sm:$0xf] }
  0x24   :  { %v1825_v4 = vld [vmem:[%s3338_s1 + $0x148] sm:$0xf0]  ;;  %v1764_v7 = vor.u32 %v2327_v0, %v1761_v1  ;;  %v1753_v10 = vld [vmem:[%s3338_s1 + $0xb8] sm:$0xf0]  ;;  %v2341_v11 = vld [vmem:[%s3338_s1 + $0x134] sm:$0xf]  ;;  %v77_v13 = vor.u32 %v75_v60, %v74_v5  ;;  %v88_v14 = vor.u32 %v87_v6, %v72_v53 }
  0x25   :  { %399 = vmatpush.bf16.msra.mxu0 %v1664_v29  ;;  %454 = vmatpush.bf16.msra.mxu3 %v1684_v43  ;;  %v1828_v8 = vor.u32 %v2343_v3, %v1825_v4  ;;  %v1817_v12 = vld [vmem:[%s3338_s1 + $0x138] sm:$0xf0]  ;;  %v1756_v15 = vor.u32 %v2325_v9, %v1753_v10  ;;  %v2323_v17 = vld [vmem:[%s3338_s1 + $0xa4] sm:$0xf]  ;;  %v1745_v18 = vld [vmem:[%s3338_s1 + $0xa8] sm:$0xf0] }
  0x26   :  { %418 = vmatpush.bf16.msra.mxu1 %v1728_v33  ;;  %v1820_v16 = vor.u32 %v2341_v11, %v1817_v12  ;;  %v2339_v19 = vld [vmem:[%s3338_s1 + $0x124] sm:$0xf]  ;;  %v1809_v20 = vld [vmem:[%s3338_s1 + $0x128] sm:$0xf0]  ;;  %v84_v21 = vsel %vm2778_vm4, 0, %v77_v13  ;;  %v95_v22 = vsel %vm2784_vm5, %v88_v14, 0  ;;  %v1748_v23 = vor.u32 %v2323_v17, %v1745_v18 }
  0x27   :  { %437 = vmatpush.bf16.msra.mxu2 %v1792_v34  ;;  %v1812_v24 = vor.u32 %v2339_v19, %v1809_v20  ;;  %v2321_v25 = vld [vmem:[%s3338_s1 + $0x94] sm:$0xf]  ;;  %v1737_v26 = vld [vmem:[%s3338_s1 + $0x98] sm:$0xf0]  ;;  %v2319_v31 = vld [vmem:[%s3338_s1 + $0x84] sm:$0xf] }
  0x28   :  { %400 = vmatmul.bf16.vlgmr.msra.gmra.mxu0 %v83_v46  ;;  %v2337_v27 = vld [vmem:[%s3338_s1 + $0x114] sm:$0xf]  ;;  %v1801_v28 = vld [vmem:[%s3338_s1 + $0x118] sm:$0xf0]  ;;  %v1740_v29 = vor.u32 %v2321_v25, %v1737_v26  ;;  %v1729_v32 = vld [vmem:[%s3338_s1 + $0x88] sm:$0xf0] }
  0x29   :  { %468 = vmatpush.bf16.msrb.mxu0 %v1788_v38  ;;  %419 = vmatmul.bf16.vlgmr.msra.gmra.mxu1 %v2712_v62  ;;  %v1804_v30 = vor.u32 %v2337_v27, %v1801_v28  ;;  %v2335_v33 = vld [vmem:[%s3338_s1 + $0x104] sm:$0xf]  ;;  %v1793_v34 = vld [vmem:[%s3338_s1 + $0x108] sm:$0xf0]  ;;  %v1732_v36 = vor.u32 %v2319_v31, %v1729_v32  ;;  %v1975_v40 = vld [vmem:[%s3340_s3 + $0xf0] sm:$0xf] }
  0x2a   :  { %487 = vmatpush.bf16.msrb.mxu1 %v1852_v39  ;;  %438 = vmatmul.bf16.vlgmr.msra.gmra.mxu2 %v2815_v49  ;;  %v1796_v37 = vor.u32 %v2335_v33, %v1793_v34  ;;  %v2382_v42 = vld [vmem:[%s3340_s3 + $0xf4] sm:$0xf0]  ;;  %v1959_v47 = vld [vmem:[%s3340_s3 + $0xd0] sm:$0xf]  ;;  %v1951_v53 = vld [vmem:[%s3340_s3 + $0xc0] sm:$0xf] }
  0x2b   :  { %455 = vmatpush.bf16.msra.mxu3 %v1676_v55  ;;  %v1976_v43 = vor.u32 %v2382_v42, %v1975_v40  ;;  %v2378_v48 = vld [vmem:[%s3340_s3 + $0xd4] sm:$0xf0]  ;;  %v2376_v54 = vld [vmem:[%s3340_s3 + $0xc4] sm:$0xf0]  ;;  %v1903_v58 = vld [vmem:[%s3340_s3 + $0x60] sm:$0xf] }
  0x2c   :  { %v1952_v56 = vor.u32 %v2376_v54, %v1951_v53  ;;  %v2364_v59 = vld [vmem:[%s3340_s3 + $0x64] sm:$0xf0]  ;;  %v146_v0 = vld [vmem:[%s3339_s2] sm:$0x3]  ;;  %v1895_v3 = vld [vmem:[%s3340_s3 + $0x50] sm:$0xf] }
  0x2d   :  { %469 = vmatpush.bf16.msrb.mxu0 %v1780_v50  ;;  %v1911_v50 = vld [vmem:[%s3340_s3 + $0x70] sm:$0xf]  ;;  %v1904_v60 = vor.u32 %v2364_v59, %v1903_v58  ;;  %v2362_v4 = vld [vmem:[%s3340_s3 + $0x54] sm:$0xf0]  ;;  %v2968_v5 = vperm.slane %v146_v0, 0  ;;  %v2978_v12 = vperm.slane %v146_v0, 1 }
  0x2e   :  { %488 = vmatpush.bf16.msrb.mxu1 %v1844_v51  ;;  %v2366_v51 = vld [vmem:[%s3340_s3 + $0x74] sm:$0xf0]  ;;  %v1896_v6 = vor.u32 %v2362_v4, %v1895_v3  ;;  %v1887_v14 = vld [vmem:[%s3340_s3 + $0x40] sm:$0xf]  ;;  %v1927_v18 = vld [vmem:[%s3340_s3 + $0x90] sm:$0xf] }
  0x2f   :  { %456 = vmatpush.bf16.msra.mxu3 %v1668_v2  ;;  %v1912_v52 = vor.u32 %v2366_v51, %v1911_v50  ;;  %v2370_v19 = vld [vmem:[%s3340_s3 + $0x94] sm:$0xf0]  ;;  %v2039_v20 = vld [vmem:[%s3340_s3 + $0x170] sm:$0xf]  ;;  %v1919_v32 = vld [vmem:[%s3340_s3 + $0x80] sm:$0xf] }
  0x30   :  { %v1879_v28 = vld [vmem:[%s3340_s3 + $0x30] sm:$0xf]  ;;  %v2368_v33 = vld [vmem:[%s3340_s3 + $0x84] sm:$0xf0]  ;;  %v2031_v34 = vld [vmem:[%s3340_s3 + $0x160] sm:$0xf] }
  0x31   :  { %470 = vmatpush.bf16.msrb.mxu0 %v1772_v61  ;;  %876 = vmatpush.bf16.msrb.mxu2 %v1912_v52  ;;  %v1943_v61 = vld [vmem:[%s3340_s3 + $0xb0] sm:$0xf]  ;;  %v2363_v40 = vld [vmem:[%s3340_s3 + $0x64] sm:$0xf]  ;;  %v1905_v42 = vld [vmem:[%s3340_s3 + $0x68] sm:$0xf0] }
  0x32   :  { %489 = vmatpush.bf16.msrb.mxu1 %v1836_v63  ;;  %457 = vmatmul.bf16.vlgmr.msra.gmra.mxu3 %v83_v46  ;;  %v2374_v63 = vld [vmem:[%s3340_s3 + $0xb4] sm:$0xf0]  ;;  %v1871_v50 = vld [vmem:[%s3340_s3 + $0x20] sm:$0xf]  ;;  %v2356_v54 = vld [vmem:[%s3340_s3 + $0x24] sm:$0xf0] }
  0x33   :  { %890 = vmatpush.bf16.msrb.mxu3 %v1976_v43  ;;  %v1944_v1 = vor.u32 %v2374_v63, %v1943_v61  ;;  %v1872_v59 = vor.u32 %v2356_v54, %v1871_v50  ;;  %v1897_v61 = vld [vmem:[%s3340_s3 + $0x58] sm:$0xf0]  ;;  %v1863_v3 = vld [vmem:[%s3340_s3 + $0x10] sm:$0xf]  ;;  %v2388_v54 = vld [vmem:[%s3340_s3 + $0x124] sm:$0xf0] }
  0x34   :  { %vm563_vm6 = vcmask 1043456   ;;  %vm564_vm7 = vsmask.f32 3328  ;;  %vm1006_vm9 = vcmask 1041408   ;;  %vm1007_vm10 = vsmask.f32 1280 }
  0x35   :  { %471 = vmatpush.bf16.msrb.mxu0 %v1764_v7  ;;  %877 = vmatpush.bf16.msrb.mxu2 %v1904_v60  ;;  %v1935_v7 = vld [vmem:[%s3340_s3 + $0xa0] sm:$0xf]  ;;  %v2394_v60 = vld [vmem:[%s3340_s3 + $0x154] sm:$0xf0]  ;;  %vm565_vm8 = vmand %vm563_vm6, %vm564_vm7  ;;  %vm1505_vm12 = vcmask 1041409   ;;  %s2523_s1 = smov [#allocation6]  }
  0x36   :  { %490 = vmatpush.bf16.msrb.mxu1 %v1828_v8  ;;  %v2372_v8 = vld [vmem:[%s3340_s3 + $0xa4] sm:$0xf0]  ;;  %vm3258_vm11 = vmand %vm1006_vm9, %vm1007_vm10  ;;  %v2454_v35 = vld [vmem:[%s3344_s7 + $0x38] sm:$0xff]  ;;  %s1641_s13 = sshll.u32 %s2523_s1, 4  ;;  %s1643_s16 = sshll.u32 %s3346_s9, 4  ;;  %vm1634_vm13 = vcmask 58368   ;;  %s1642_s13 = int_to_ptr.vmem [resolvable:$true] %s1641_s13  ;;  %s1644_s16 = int_to_ptr.hbm [resolvable:$true] %s1643_s16 }
  0x37   :  { %v1936_v11 = vor.u32 %v2372_v8, %v1935_v7  ;;  %v2354_v8 = vld [vmem:[%s3340_s3 + $0x14] sm:$0xf0] }
  0x38   :  { %405 = vmatmul.bf16.gmra.mxu0 %v84_v21 }
  0x39   :  { %472 = vmatpush.bf16.msrb.mxu0 %v1756_v15  ;;  %424 = vmatmul.bf16.gmra.mxu1 %v2794_v41  ;;  %v2360_v15 = vld [vmem:[%s3340_s3 + $0x44] sm:$0xf0] }
  0x3a   :  { %491 = vmatpush.bf16.msrb.mxu1 %v1820_v16  ;;  %443 = vmatmul.bf16.gmra.mxu2 %v95_v22  ;;  %v1888_v17 = vor.u32 %v2360_v15, %v1887_v14  ;;  %v1864_v15 = vor.u32 %v2354_v8, %v1863_v3  ;;  %v2389_v3 = vld [vmem:[%s3340_s3 + $0x134] sm:$0xf] }
  0x3b   :  { %878 = vmatpush.bf16.msrb.mxu2 %v1896_v6 }
  0x3d   :  { %473 = vmatpush.bf16.msrb.mxu0 %v1748_v23  ;;  %v2365_v23 = vld [vmem:[%s3340_s3 + $0x74] sm:$0xf] }
  0x3e   :  { %492 = vmatpush.bf16.msrb.mxu1 %v1812_v24  ;;  %v1913_v24 = vld [vmem:[%s3340_s3 + $0x78] sm:$0xf0] }
  0x3f   :  { %879 = vmatpush.bf16.msrb.mxu2 %v1888_v17  ;;  %v1916_v27 = vor.u32 %v2365_v23, %v1913_v24  ;;  %v2359_v17 = vld [vmem:[%s3340_s3 + $0x44] sm:$0xf]  ;;  %v1855_v23 = vld [vmem:[%s3340_s3] sm:$0xf] }
  0x41   :  { %474 = vmatpush.bf16.msrb.mxu0 %v1740_v29  ;;  %v2358_v29 = vld [vmem:[%s3340_s3 + $0x34] sm:$0xf0] }
  0x42   :  { %493 = vmatpush.bf16.msrb.mxu1 %v1804_v30  ;;  %462 = vmatmul.bf16.gmra.mxu3 %v84_v21  ;;  %v1928_v21 = vor.u32 %v2370_v19, %v1927_v18  ;;  %v1880_v31 = vor.u32 %v2358_v29, %v1879_v28  ;;  %v1889_v18 = vld [vmem:[%s3340_s3 + $0x48] sm:$0xf0]  ;;  %v2390_v28 = vld [vmem:[%s3340_s3 + $0x134] sm:$0xf0] }
  0x44   :  { %880 = vmatpush.bf16.msrb.mxu2 %v1880_v31 }
  0x45   :  { %475 = vmatpush.bf16.msrb.mxu0 %v1732_v36 }
  0x46   :  { %494 = vmatpush.bf16.msrb.mxu1 %v1796_v37 }
  0x48   :  { %476 = vmatmul.bf16.vlgmr.msrb.gmra.mxu0 %v2712_v62  ;;  %v1967_v62 = vld [vmem:[%s3340_s3 + $0xe0] sm:$0xf]  ;;  %881 = vmatpush.bf16.msrb.mxu2 %v1872_v59 }
  0x49   :  { %495 = vmatmul.bf16.vlgmr.msrb.gmra.mxu1 %v2815_v49  ;;  %v1960_v49 = vor.u32 %v2378_v48, %v1959_v47  ;;  %v1908_v47 = vor.u32 %v2363_v40, %v1905_v42  ;;  %v2397_v48 = vld [vmem:[%s3340_s3 + $0x174] sm:$0xf]  ;;  %v1977_v40 = vld [vmem:[%s3340_s3 + $0xf8] sm:$0xf0]  ;;  %v2391_v42 = vld [vmem:[%s3340_s3 + $0x144] sm:$0xf] }
  0x4a   :  { %918 = vmatpush.bf16.msra.mxu1 %v1916_v27  ;;  %v2007_v27 = vld [vmem:[%s3340_s3 + $0x130] sm:$0xf] }
  0x4c   :  { %882 = vmatpush.bf16.msrb.mxu2 %v1864_v15 }
  0x4e   :  { %919 = vmatpush.bf16.msra.mxu1 %v1908_v47 }
  0x58   :  { %481 = vmatmul.bf16.gmra.mxu0 %v2794_v41  ;;  %v2380_v41 = vld [vmem:[%s3340_s3 + $0xe4] sm:$0xf0] }
  0x59   :  { %500 = vmatmul.bf16.gmra.mxu1 %v95_v22  ;;  %v1968_v45 = vor.u32 %v2380_v41, %v1967_v62  ;;  %v2398_v22 = vld [vmem:[%s3340_s3 + $0x174] sm:$0xf0] }
  0x5a   :  { %v2040_v26 = vor.u32 %v2398_v22, %v2039_v20  ;;  %v2025_v22 = vld [vmem:[%s3340_s3 + $0x158] sm:$0xf0] }
  0x5b   :  { %891 = vmatpush.bf16.msrb.mxu3 %v1968_v45 }
  0x5c   :  { %904 = vmatpush.bf16.msra.mxu0 %v2040_v26  ;;  %v2352_v26 = vld [vmem:[%s3340_s3 + $0x4] sm:$0xf0] }
  0x5f   :  { %892 = vmatpush.bf16.msrb.mxu3 %v1960_v49  ;;  %v2041_v49 = vld [vmem:[%s3340_s3 + $0x178] sm:$0xf0] }
  0x60   :  { %v2044_v53 = vor.u32 %v2397_v48, %v2041_v49 }
  0x63   :  { %893 = vmatpush.bf16.msrb.mxu3 %v1952_v56  ;;  %v2023_v56 = vld [vmem:[%s3340_s3 + $0x150] sm:$0xf] }
  0x64   :  { %v2024_v63 = vor.u32 %v2394_v60, %v2023_v56  ;;  %v2355_v56 = vld [vmem:[%s3340_s3 + $0x24] sm:$0xf] }
  0x65   :  { %v2379_v60 = vld [vmem:[%s3340_s3 + $0xe4] sm:$0xf] }
  0x67   :  { %894 = vmatpush.bf16.msrb.mxu3 %v1944_v1  ;;  %v2395_v1 = vld [vmem:[%s3340_s3 + $0x164] sm:$0xf] }
  0x6b   :  { %895 = vmatpush.bf16.msrb.mxu3 %v1936_v11 }
  0x6f   :  { %896 = vmatpush.bf16.msrb.mxu3 %v1928_v21  ;;  %v2393_v21 = vld [vmem:[%s3340_s3 + $0x154] sm:$0xf] }
  0xa5   :  { %v401_v38 = vpop.f32.mrf.mxu0 }
  0xa6   :  { %v2907_v39 = vpop.f32.mrf.mxu1  ;;  %v402_v16 = vadd.f32 %v401_v38, %v2968_v5  ;;  %v1920_v38 = vor.u32 %v2368_v33, %v1919_v32  ;;  %v1856_v32 = vor.u32 %v2352_v26, %v1855_v23  ;;  %v2357_v33 = vld [vmem:[%s3340_s3 + $0x34] sm:$0xf]  ;;  %v1983_v26 = vld [vmem:[%s3340_s3 + $0x100] sm:$0xf] }
  0xa8   :  { %v421_v30 = vadd.f32 %v2907_v39, %v402_v16  ;;  %v2396_v39 = vld [vmem:[%s3340_s3 + $0x164] sm:$0xf0]  ;;  %897 = vmatpush.bf16.msrb.mxu3 %v1920_v38  ;;  %v2008_v38 = vor.u32 %v2390_v28, %v2007_v27  ;;  %883 = vmatpush.bf16.msrb.mxu2 %v1856_v32  ;;  %v2351_v28 = vld [vmem:[%s3340_s3 + $0x4] sm:$0xf] }
  0xa9   :  { %v2032_v45 = vor.u32 %v2396_v39, %v2031_v34  ;;  %v2392_v16 = vld [vmem:[%s3340_s3 + $0x144] sm:$0xf0]  ;;  %v1881_v34 = vld [vmem:[%s3340_s3 + $0x38] sm:$0xf0]  ;;  %v2381_v39 = vld [vmem:[%s3340_s3 + $0xf4] sm:$0xf] }
  0xaa   :  { %v2384_v27 = vld [vmem:[%s3340_s3 + $0x104] sm:$0xf0]  ;;  %v2375_v32 = vld [vmem:[%s3340_s3 + $0xc4] sm:$0xf] }
  0xab   :  { %905 = vmatpush.bf16.msra.mxu0 %v2032_v45 }
  0xac   :  { %946 = vmatpush.bf16.msra.mxu3 %v2044_v53  ;;  %v1999_v53 = vld [vmem:[%s3340_s3 + $0x120] sm:$0xf] }
  0xad   :  { %v2921_v44 = vpop.f32.mrf.mxu0  ;;  %v439_v9 = vpop.f32.mrf.mxu2  ;;  %v2000_v59 = vor.u32 %v2388_v54, %v1999_v53 }
  0xae   :  { %v2923_v46 = vpop.f32.mrf.mxu1  ;;  %v440_v43 = vadd.f32 %v439_v9, %v421_v30  ;;  %v404_v51 = vadd.f32 %v2921_v44, %v2968_v5  ;;  %v2361_v44 = vld [vmem:[%s3340_s3 + $0x54] sm:$0xf]  ;;  %v2015_v9 = vld [vmem:[%s3340_s3 + $0x140] sm:$0xf] }
  0xaf   :  { %v1900_v0 = vor.u32 %v2361_v44, %v1897_v61  ;;  %906 = vmatpush.bf16.msra.mxu0 %v2024_v63  ;;  %v2016_v20 = vor.u32 %v2392_v16, %v2015_v9  ;;  %v1969_v44 = vld [vmem:[%s3340_s3 + $0xe8] sm:$0xf0]  ;;  %v1991_v9 = vld [vmem:[%s3340_s3 + $0x110] sm:$0xf]  ;;  %v2377_v16 = vld [vmem:[%s3340_s3 + $0xd4] sm:$0xf] }
  0xb0   :  { %v506_v4 = vmax.f32 %v440_v43, 0.0  ;;  %v423_v11 = vadd.f32 %v2923_v46, %v404_v51  ;;  %v1892_v46 = vor.u32 %v2359_v17, %v1889_v18  ;;  %v1961_v17 = vld [vmem:[%s3340_s3 + $0xd8] sm:$0xf0] }
  0xb1   :  { %920 = vmatpush.bf16.msra.mxu1 %v1900_v0 }
  0xb3   :  { %907 = vmatpush.bf16.msra.mxu0 %v2016_v20 }
  0xb5   :  { %v2943_v55 = vpop.f32.mrf.mxu0  ;;  %v458_v2 = vpop.f32.mrf.mxu3  ;;  %921 = vmatpush.bf16.msra.mxu1 %v1892_v46  ;;  %v1964_v46 = vor.u32 %v2377_v16, %v1961_v17 }
  0xb6   :  { %v2945_v57 = vpop.f32.mrf.mxu1  ;;  %v459_v25 = vadd.f32 %v458_v2, %v2978_v12  ;;  %v441_v52 = vpop.f32.mrf.mxu2  ;;  %v2033_v2 = vld [vmem:[%s3340_s3 + $0x168] sm:$0xf0] }
  0xb7   :  { %v2036_v7 = vor.u32 %v2395_v1, %v2033_v2  ;;  %v442_v29 = vadd.f32 %v441_v52, %v423_v11  ;;  %908 = vmatpush.bf16.msra.mxu0 %v2008_v38  ;;  %v1972_v2 = vor.u32 %v2379_v60, %v1969_v44  ;;  %v2386_v11 = vld [vmem:[%s3340_s3 + $0x114] sm:$0xf0] }
  0xb9   :  { %947 = vmatpush.bf16.msra.mxu3 %v2036_v7  ;;  %v508_v48 = vmax.f32 %v442_v29, 0.0 }
  0xbb   :  { %909 = vmatpush.bf16.msra.mxu0 %v2000_v59  ;;  %v1937_v59 = vld [vmem:[%s3340_s3 + $0xa8] sm:$0xf0] }
  0xbd   :  { %v2976_v10 = vpop.f32.mrf.mxu0  ;;  %v460_v36 = vpop.f32.mrf.mxu3 }
  0xbe   :  { %v2980_v13 = vpop.f32.mrf.mxu1  ;;  %v461_v14 = vadd.f32 %v460_v36, %v2978_v12  ;;  %v407_v36 = vadd.f32 %v2943_v55, %v2968_v5  ;;  %v2017_v55 = vld [vmem:[%s3340_s3 + $0x148] sm:$0xf0]  ;;  %v444_v45 = vpop.f32.mrf.mxu2 }
  0xbf   :  { %v2020_v47 = vor.u32 %v2391_v42, %v2017_v55 }
  0xc0   :  { %v426_v51 = vadd.f32 %v2945_v57, %v407_v36  ;;  %v1873_v57 = vld [vmem:[%s3340_s3 + $0x28] sm:$0xf0] }
  0xc1   :  { %v1876_v1 = vor.u32 %v2355_v56, %v1873_v57 }
  0xc2   :  { %v445_v61 = vadd.f32 %v444_v45, %v426_v51  ;;  %v1985_v51 = vld [vmem:[%s3340_s3 + $0x108] sm:$0xf0] }
  0xc4   :  { %v510_v18 = vmax.f32 %v445_v61, 0.0  ;;  %v2369_v61 = vld [vmem:[%s3340_s3 + $0x94] sm:$0xf] }
  0xc5   :  { %v477_v37 = vpop.f32.mrf.mxu0 }
  0xc6   :  { %v478_v62 = vadd.f32 %v477_v37, %v459_v25  ;;  %v496_v41 = vpop.f32.mrf.mxu1  ;;  %v2028_v25 = vor.u32 %v2393_v21, %v2025_v22  ;;  %v463_v37 = vpop.f32.mrf.mxu3  ;;  %v2387_v21 = vld [vmem:[%s3340_s3 + $0x124] sm:$0xf]  ;;  %v2001_v22 = vld [vmem:[%s3340_s3 + $0x128] sm:$0xf0] }
  0xc7   :  { %v464_v49 = vadd.f32 %v463_v37, %v2978_v12 }
  0xc8   :  { %v497_v58 = vadd.f32 %v496_v41, %v478_v62  ;;  %v1884_v62 = vor.u32 %v2357_v33, %v1881_v34  ;;  %v1980_v41 = vor.u32 %v2381_v39, %v1977_v40  ;;  %948 = vmatpush.bf16.msra.mxu3 %v2028_v25  ;;  %v2004_v25 = vor.u32 %v2387_v21, %v2001_v22  ;;  %v1953_v33 = vld [vmem:[%s3340_s3 + $0xc8] sm:$0xf0]  ;;  %v2385_v39 = vld [vmem:[%s3340_s3 + $0x114] sm:$0xf] }
  0xc9   :  { %v1956_v38 = vor.u32 %v2375_v32, %v1953_v33 }
  0xca   :  { %v507_v6 = vmax.f32 %v497_v58, 0.0  ;;  %932 = vmatpush.bf16.msra.mxu2 %v1980_v41  ;;  %922 = vmatpush.bf16.msra.mxu1 %v1884_v62  ;;  %v1993_v62 = vld [vmem:[%s3340_s3 + $0x118] sm:$0xf0] }
  0xcb   :  { %v1996_v55 = vor.u32 %v2385_v39, %v1993_v62 }
  0xcc   :  { %v514_v19 = vmax.f32 %v506_v4, %v507_v6  ;;  %949 = vmatpush.bf16.msra.mxu3 %v2020_v47  ;;  %v2009_v4 = vld [vmem:[%s3340_s3 + $0x138] sm:$0xf0]  ;;  %v409_v6 = vadd.f32 %v2976_v10, %v2968_v5  ;;  %v1992_v5 = vor.u32 %v2386_v11, %v1991_v9  ;;  %v2373_v47 = vld [vmem:[%s3340_s3 + $0xb4] sm:$0xf] }
  0xcd   :  { %v479_v24 = vpop.f32.mrf.mxu0  ;;  %v2012_v7 = vor.u32 %v2389_v3, %v2009_v4  ;;  %v1865_v10 = vld [vmem:[%s3340_s3 + $0x18] sm:$0xf0]  ;;  %v1921_v3 = vld [vmem:[%s3340_s3 + $0x88] sm:$0xf0] }
  0xce   :  { %518 = vst [vmem:[#allocation2] sm:$0xff] %v514_v19  ;;  %v480_v30 = vadd.f32 %v479_v24, %v461_v14  ;;  %v498_v31 = vpop.f32.mrf.mxu1  ;;  %923 = vmatpush.bf16.msra.mxu1 %v1876_v1  ;;  %v2353_v14 = vld [vmem:[%s3340_s3 + $0x14] sm:$0xf]  ;;  %v465_v15 = vpop.f32.mrf.mxu3  ;;  %933 = vmatpush.bf16.msra.mxu2 %v1972_v2  ;;  %v428_v23 = vadd.f32 %v2980_v13, %v409_v6  ;;  %v2367_v2 = vld [vmem:[%s3340_s3 + $0x84] sm:$0xf] }
  0xcf   :  { %v1868_v20 = vor.u32 %v2353_v14, %v1865_v10  ;;  %v446_v24 = vpop.f32.mrf.mxu2  ;;  %v466_v29 = vadd.f32 %v465_v15, %v2978_v12  ;;  %910 = vmatpush.bf16.msra.mxu0 %v1992_v5  ;;  %v1984_v13 = vor.u32 %v2384_v27, %v1983_v26 }
  0xd0   :  { %v499_v43 = vadd.f32 %v498_v31, %v480_v30  ;;  %950 = vmatpush.bf16.msra.mxu3 %v2012_v7  ;;  %v1857_v31 = vld [vmem:[%s3340_s3 + $0x8] sm:$0xf0]  ;;  %v447_v40 = vadd.f32 %v446_v24, %v428_v23  ;;  %v1924_v7 = vor.u32 %v2367_v2, %v1921_v3  ;;  %v2413_v2 = vld [vmem:[#allocation3 + $0x74] sm:$0xf]  ;;  %v2105_v3 = vld [vmem:[#allocation3 + $0x78] sm:$0xf0] }
  0xd1   :  { %v1860_v12 = vor.u32 %v2351_v28, %v1857_v31 }
  0xd2   :  { %v509_v50 = vmax.f32 %v499_v43, 0.0  ;;  %924 = vmatpush.bf16.msra.mxu1 %v1868_v20  ;;  %934 = vmatpush.bf16.msra.mxu2 %v1964_v46 }
  0xd3   :  { %911 = vmatpush.bf16.msra.mxu0 %v1984_v13 }
  0xd4   :  { %v515_v52 = vmax.f32 %v508_v48, %v509_v50  ;;  %951 = vmatpush.bf16.msra.mxu3 %v2004_v25  ;;  %v1945_v48 = vld [vmem:[%s3340_s3 + $0xb8] sm:$0xf0]  ;;  %v2383_v50 = vld [vmem:[%s3340_s3 + $0x104] sm:$0xf] }
  0xd5   :  { %v482_v58 = vpop.f32.mrf.mxu0  ;;  %v1988_v56 = vor.u32 %v2383_v50, %v1985_v51  ;;  %v2151_v50 = vld [vmem:[#allocation3 + $0xd0] sm:$0xf] }
  0xd6   :  { %519 = vst [vmem:[#allocation2 + $0x8] sm:$0xff] %v515_v52  ;;  %v483_v63 = vadd.f32 %v482_v58, %v464_v49  ;;  %v501_v0 = vpop.f32.mrf.mxu1  ;;  %925 = vmatpush.bf16.msra.mxu1 %v1860_v12  ;;  %935 = vmatpush.bf16.msra.mxu2 %v1956_v38  ;;  %v1948_v49 = vor.u32 %v2373_v47, %v1945_v48  ;;  %v512_v52 = vmax.f32 %v447_v40, 0.0  ;;  %v2371_v58 = vld [vmem:[%s3340_s3 + $0xa4] sm:$0xf]  ;;  %v2430_v38 = vld [vmem:[#allocation3 + $0xf4] sm:$0xf0] }
  0xd7   :  { %v1940_v60 = vor.u32 %v2371_v58, %v1937_v59  ;;  %v2095_v40 = vld [vmem:[#allocation3 + $0x60] sm:$0xf]  ;;  %v3241_v47 = vld [vmem:[%s3341_s4] sm:$0x3]  ;;  %v2087_v48 = vld [vmem:[#allocation3 + $0x50] sm:$0xf] }
  0xd8   :  { %v502_v8 = vadd.f32 %v501_v0, %v483_v63  ;;  %952 = vmatpush.bf16.msra.mxu3 %v1996_v55  ;;  %v1929_v63 = vld [vmem:[%s3340_s3 + $0x98] sm:$0xf0]  ;;  %v2428_v55 = vld [vmem:[#allocation3 + $0xe4] sm:$0xf0]  ;;  %v626_v51 = vperm.slane %v3241_v47, 0 }
  0xd9   :  { %v1932_v0 = vor.u32 %v2369_v61, %v1929_v63  ;;  %v2079_v58 = vld [vmem:[#allocation3 + $0x40] sm:$0xf]  ;;  %v2408_v59 = vld [vmem:[#allocation3 + $0x44] sm:$0xf0]  ;;  %v2231_v61 = vld [vmem:[#allocation3 + $0x170] sm:$0xf] }
  0xda   :  { %v511_v19 = vmax.f32 %v502_v8, 0.0  ;;  %936 = vmatpush.bf16.msra.mxu2 %v1948_v49  ;;  %v2410_v49 = vld [vmem:[#allocation3 + $0x54] sm:$0xf0] }
  0xdb   :  { %v2446_v63 = vld [vmem:[#allocation3 + $0x174] sm:$0xf0] }
  0xdc   :  { %v516_v30 = vmax.f32 %v510_v18, %v511_v19  ;;  %953 = vmatpush.bf16.msra.mxu3 %v1988_v56 }
  0xdd   :  { %v484_v34 = vpop.f32.mrf.mxu0  ;;  %v522_v36 = vld [vmem:[#allocation2] ss:$2 sm:$0xff]  ;;  %v526_v37 = vld [vmem:[#allocation2 + $0x1] ss:$2 sm:$0xff] }
  0xde   :  { %520 = vst [vmem:[#allocation2 + $0x10] sm:$0xff] %v516_v30  ;;  %v485_v42 = vadd.f32 %v484_v34, %v466_v29  ;;  %v529_v43 = vmax.f32 %v522_v36, %v526_v37  ;;  %v503_v41 = vpop.f32.mrf.mxu1  ;;  %937 = vmatpush.bf16.msra.mxu2 %v1940_v60  ;;  %v2103_v34 = vld [vmem:[#allocation3 + $0x70] sm:$0xf]  ;;  %v2414_v36 = vld [vmem:[#allocation3 + $0x74] sm:$0xf0]  ;;  %v2080_v60 = vor.u32 %v2408_v59, %v2079_v58 }
  0xdf   :  { %v2167_v37 = vld [vmem:[#allocation3 + $0xf0] sm:$0xf]  ;;  %v2104_v12 = vor.u32 %v2414_v36, %v2103_v34  ;;  %v2402_v34 = vld [vmem:[#allocation3 + $0x14] sm:$0xf0]  ;;  %v2207_v36 = vld [vmem:[#allocation3 + $0x140] sm:$0xf] }
  0xe0   :  { %v504_v45 = vadd.f32 %v503_v41, %v485_v42  ;;  %v531_v54 = vpack.c.bf16 %v529_v43, %v529_v43  ;;  %v2168_v39 = vor.u32 %v2430_v38, %v2167_v37  ;;  %v2412_v42 = vld [vmem:[#allocation3 + $0x64] sm:$0xf0]  ;;  %v2159_v43 = vld [vmem:[#allocation3 + $0xe0] sm:$0xf]  ;;  %v2407_v38 = vld [vmem:[#allocation3 + $0x44] sm:$0xf] }
  0xe1   :  { %1332 = vmatpush.bf16.msrb.mxu0 %v2104_v12  ;;  %v2096_v41 = vor.u32 %v2412_v42, %v2095_v40  ;;  %v2440_v12 = vld [vmem:[#allocation3 + $0x144] sm:$0xf0]  ;;  %v2119_v40 = vld [vmem:[#allocation3 + $0x90] sm:$0xf]  ;;  %v2418_v42 = vld [vmem:[#allocation3 + $0x94] sm:$0xf0] }
  0xe2   :  { %v513_v53 = vmax.f32 %v504_v45, 0.0  ;;  %v535_v44 = vunpack.c.l.b16 %v531_v54  ;;  %938 = vmatpush.bf16.msra.mxu2 %v1932_v0  ;;  %1345 = vmatpush.bf16.msrb.mxu1 %v2168_v39  ;;  %v2160_v45 = vor.u32 %v2428_v55, %v2159_v43  ;;  %v2426_v54 = vld [vmem:[#allocation3 + $0xd4] sm:$0xf0]  ;;  %v2081_v39 = vld [vmem:[#allocation3 + $0x48] sm:$0xf0] }
  0xe3   :  { %v2152_v56 = vor.u32 %v2426_v54, %v2151_v50  ;;  %v2047_v55 = vld [vmem:[#allocation3] sm:$0xf]  ;;  %v2400_v50 = vld [vmem:[#allocation3 + $0x4] sm:$0xf0]  ;;  %v2405_v59 = vld [vmem:[#allocation3 + $0x34] sm:$0xf] }
  0xe4   :  { %v517_v57 = vmax.f32 %v512_v52, %v513_v53  ;;  %v537_v1 = vpack.c.b16 %v535_v44, %v535_v44  ;;  %v2088_v53 = vor.u32 %v2410_v49, %v2087_v48  ;;  %v2084_v49 = vor.u32 %v2407_v38, %v2081_v39  ;;  %v2111_v58 = vld [vmem:[#allocation3 + $0x80] sm:$0xf] }
  0xe5   :  { %1333 = vmatpush.bf16.msrb.mxu0 %v2096_v41  ;;  %v2208_v41 = vor.u32 %v2440_v12, %v2207_v36  ;;  %v2153_v12 = vld [vmem:[#allocation3 + $0xd8] sm:$0xf0] }
  0xe6   :  { %521 = vst [vmem:[#allocation2 + $0x18] sm:$0xff] %v517_v57  ;;  %v540_v9 = vshrl.u32 %v537_v1, 16  ;;  %v543_v11 = vshll.u32 %v537_v1, 16  ;;  %939 = vmatpush.bf16.msra.mxu2 %v1924_v7  ;;  %1346 = vmatpush.bf16.msrb.mxu1 %v2160_v45  ;;  %v2143_v57 = vld [vmem:[#allocation3 + $0xc0] sm:$0xf]  ;;  %v2232_v1 = vor.u32 %v2446_v63, %v2231_v61 }
  0xe7   :  { %v2406_v7 = vld [vmem:[#allocation3 + $0x34] sm:$0xf0]  ;;  %v2429_v61 = vld [vmem:[#allocation3 + $0xf4] sm:$0xf]  ;;  %v2169_v63 = vld [vmem:[#allocation3 + $0xf8] sm:$0xf0] }
  0xe8   :  { %v557_v5 = vrot.slane %v543_v11, 1  ;;  %v542_v10 = vrot.slane %v540_v9, 7 }
  0xe9   :  { %1334 = vmatpush.bf16.msrb.mxu0 %v2088_v53  ;;  %v2438_v53 = vld [vmem:[#allocation3 + $0x134] sm:$0xf0] }
  0xea   :  { %v545_v20 = vor.u32 %v543_v11, %v542_v10  ;;  %v558_v46 = vor.u32 %v557_v5, %v540_v9  ;;  %1347 = vmatpush.bf16.msrb.mxu1 %v2152_v56  ;;  %v2422_v9 = vld [vmem:[#allocation3 + $0xb4] sm:$0xf0]  ;;  %v2223_v11 = vld [vmem:[#allocation3 + $0x160] sm:$0xf]  ;;  %v2120_v56 = vor.u32 %v2418_v42, %v2119_v40  ;;  %v2441_v42 = vld [vmem:[#allocation3 + $0x154] sm:$0xf] }
  0xec   :  { %v555_v24 = vsel %vm2778_vm4, 0, %v545_v20  ;;  %v566_v26 = vsel %vm565_vm8, %v558_v46, 0  ;;  %v2404_v46 = vld [vmem:[#allocation3 + $0x24] sm:$0xf0] }
  0xed   :  { %v524_v4 = vld [vmem:[#allocation2 + $0x10] ss:$2 sm:$0xff]  ;;  %v528_v6 = vld [vmem:[#allocation2 + $0x11] ss:$2 sm:$0xff]  ;;  %v572_v29 = vunpack.c.l.b16 %v555_v24  ;;  %v573_v13 = vunpack.c.l.b16 %v566_v26  ;;  %1335 = vmatpush.bf16.msrb.mxu0 %v2080_v60 }
  0xee   :  { %v530_v8 = vmax.f32 %v524_v4, %v528_v6  ;;  %v2071_v4 = vld [vmem:[#allocation3 + $0x30] sm:$0xf]  ;;  %v2108_v6 = vor.u32 %v2413_v2, %v2105_v3  ;;  %v2409_v26 = vld [vmem:[#allocation3 + $0x54] sm:$0xf] }
  0xef   :  { %v2072_v10 = vor.u32 %v2406_v7, %v2071_v4  ;;  %v2215_v24 = vld [vmem:[#allocation3 + $0x150] sm:$0xf]  ;;  %v2445_v4 = vld [vmem:[#allocation3 + $0x174] sm:$0xf]  ;;  %v2048_v7 = vor.u32 %v2400_v50, %v2047_v55  ;;  %v2432_v55 = vld [vmem:[#allocation3 + $0x104] sm:$0xf0] }
  0xf0   :  { %v532_v14 = vpack.c.bf16 %v530_v8, %v530_v8  ;;  %v2135_v8 = vld [vmem:[#allocation3 + $0xb0] sm:$0xf]  ;;  %v2049_v50 = vld [vmem:[#allocation3 + $0x8] sm:$0xf0] }
  0xf1   :  { %1336 = vmatpush.bf16.msrb.mxu0 %v2072_v10  ;;  %v2172_v10 = vor.u32 %v2429_v61, %v2169_v63 }
  0xf2   :  { %v536_v15 = vunpack.c.l.b16 %v532_v14  ;;  %v2444_v14 = vld [vmem:[#allocation3 + $0x164] sm:$0xf0] }
  0xf4   :  { %v538_v16 = vpack.c.b16 %v536_v15, %v536_v15  ;;  %v631_v17 = vpack.c.b16 %v536_v15, %v535_v44  ;;  %v2424_v44 = vld [vmem:[#allocation3 + $0xc4] sm:$0xf0]  ;;  %v2411_v15 = vld [vmem:[#allocation3 + $0x64] sm:$0xf] }
  0xf5   :  { %v2144_v0 = vor.u32 %v2424_v44, %v2143_v57  ;;  %v2073_v57 = vld [vmem:[#allocation3 + $0x38] sm:$0xf0]  ;;  %v2416_v44 = vld [vmem:[#allocation3 + $0x84] sm:$0xf0] }
  0xf6   :  { %v547_v18 = vshrl.u32 %v538_v16, 16  ;;  %v550_v19 = vshll.u32 %v538_v16, 16  ;;  %898 = vmatmul.bf16.vlgmr.msrb.gmra.mxu3 %v631_v17  ;;  %v2224_v16 = vor.u32 %v2444_v14, %v2223_v11  ;;  %v2436_v11 = vld [vmem:[#allocation3 + $0x124] sm:$0xf0] }
  0xf7   :  { %1371 = vmatpush.bf16.msrb.mxu3 %v2108_v6  ;;  %1348 = vmatpush.bf16.msrb.mxu1 %v2144_v0  ;;  %v2233_v6 = vld [vmem:[#allocation3 + $0x178] sm:$0xf0] }
  0xf8   :  { %v559_v21 = vrot.slane %v550_v19, 1  ;;  %v549_v22 = vrot.slane %v547_v18, 7 }
  0xfa   :  { %v552_v23 = vor.u32 %v550_v19, %v549_v22  ;;  %v560_v25 = vor.u32 %v559_v21, %v547_v18  ;;  %v2063_v18 = vld [vmem:[#allocation3 + $0x20] sm:$0xf]  ;;  %v2136_v19 = vor.u32 %v2422_v9, %v2135_v8  ;;  %v2420_v22 = vld [vmem:[#allocation3 + $0xa4] sm:$0xf0]  ;;  %v2076_v8 = vor.u32 %v2405_v59, %v2073_v57  ;;  %v2439_v57 = vld [vmem:[#allocation3 + $0x144] sm:$0xf] }
  0xfb   :  { %v2127_v21 = vld [vmem:[#allocation3 + $0xa0] sm:$0xf] }
  0xfc   :  { %v556_v27 = vsel %vm2778_vm4, 0, %v552_v23  ;;  %v567_v28 = vsel %vm565_vm8, %v560_v25, 0  ;;  %v2442_v25 = vld [vmem:[#allocation3 + $0x154] sm:$0xf0]  ;;  %1349 = vmatpush.bf16.msrb.mxu1 %v2136_v19  ;;  %v2128_v37 = vor.u32 %v2420_v22, %v2127_v21  ;;  %v2191_v9 = vld [vmem:[#allocation3 + $0x120] sm:$0xf]  ;;  %v2236_v19 = vor.u32 %v2445_v4, %v2233_v6 }
  0xfd   :  { %v574_v30 = vunpack.c.l.b16 %v556_v27  ;;  %v575_v31 = vunpack.c.l.b16 %v567_v28  ;;  %v627_v27 = vperm.slane %v3241_v47, 1  ;;  %v2217_v47 = vld [vmem:[#allocation3 + $0x158] sm:$0xf0] }
  0xfe   :  { %v2201_v4 = vld [vmem:[#allocation3 + $0x138] sm:$0xf0] }
  0xff   :  { %v630_v32 = vpack.c.b16 %v574_v30, %v572_v29  ;;  %v632_v33 = vpack.c.b16 %v575_v31, %v573_v13  ;;  %v2216_v29 = vor.u32 %v2442_v25, %v2215_v24  ;;  %v2089_v30 = vld [vmem:[#allocation3 + $0x58] sm:$0xf0]  ;;  %v2064_v31 = vor.u32 %v2404_v46, %v2063_v18  ;;  %v2443_v24 = vld [vmem:[#allocation3 + $0x164] sm:$0xf]  ;;  %v2225_v25 = vld [vmem:[#allocation3 + $0x168] sm:$0xf0] }
 0x100   :  { %1350 = vmatpush.bf16.msrb.mxu1 %v2128_v37  ;;  %v2228_v36 = vor.u32 %v2443_v24, %v2225_v25  ;;  %v2425_v37 = vld [vmem:[#allocation3 + $0xd4] sm:$0xf]  ;;  %v2415_v24 = vld [vmem:[#allocation3 + $0x84] sm:$0xf]  ;;  %v2113_v25 = vld [vmem:[#allocation3 + $0x88] sm:$0xf0] }
 0x101   :  { %884 = vmatmul.bf16.vlgmr.msrb.gmra.mxu2 %v630_v32  ;;  %912 = vmatmul.bf16.vlgmr.msra.gmra.mxu0 %v632_v33 }
 0x102   :  { %926 = vmatmul.bf16.vlgmr.msra.gmra.mxu1 %v630_v32  ;;  %1358 = vmatpush.bf16.msrb.mxu2 %v2232_v1  ;;  %v2092_v32 = vor.u32 %v2409_v26, %v2089_v30 }
 0x103   :  { %1337 = vmatpush.bf16.msrb.mxu0 %v2064_v31 }
 0x104   :  { %1351 = vmatpush.bf16.msrb.mxu1 %v2120_v56 }
 0x106   :  { %954 = vmatmul.bf16.vlgmr.msra.gmra.mxu3 %v632_v33  ;;  %1359 = vmatpush.bf16.msrb.mxu2 %v2224_v16  ;;  %v2055_v33 = vld [vmem:[#allocation3 + $0x10] sm:$0xf]  ;;  %v2403_v16 = vld [vmem:[#allocation3 + $0x24] sm:$0xf] }
 0x107   :  { %v2056_v48 = vor.u32 %v2402_v34, %v2055_v33  ;;  %v2057_v33 = vld [vmem:[#allocation3 + $0x18] sm:$0xf0] }
 0x109   :  { %1338 = vmatpush.bf16.msrb.mxu0 %v2056_v48  ;;  %v2156_v48 = vor.u32 %v2425_v37, %v2153_v12 }
 0x10a   :  { %1360 = vmatpush.bf16.msrb.mxu2 %v2216_v29  ;;  %v2434_v29 = vld [vmem:[#allocation3 + $0x114] sm:$0xf0] }
 0x10d   :  { %1339 = vmatpush.bf16.msrb.mxu0 %v2048_v7  ;;  %v2419_v7 = vld [vmem:[#allocation3 + $0xa4] sm:$0xf] }
 0x10e   :  { %1361 = vmatpush.bf16.msrb.mxu2 %v2208_v41  ;;  %v2175_v41 = vld [vmem:[#allocation3 + $0x100] sm:$0xf] }
 0x10f   :  { %v2176_v59 = vor.u32 %v2432_v55, %v2175_v41 }
 0x111   :  { %940 = vmatmul.bf16.vlgmr.msra.gmra.mxu2 %v631_v17  ;;  %v2097_v17 = vld [vmem:[#allocation3 + $0x68] sm:$0xf0]  ;;  %1384 = vmatpush.bf16.msra.mxu0 %v2172_v10 }
 0x112   :  { %v2100_v20 = vor.u32 %v2411_v15, %v2097_v17  ;;  %v2112_v15 = vor.u32 %v2416_v44, %v2111_v58  ;;  %v2065_v17 = vld [vmem:[#allocation3 + $0x28] sm:$0xf0] }
 0x113   :  { %v2068_v26 = vor.u32 %v2403_v16, %v2065_v17 }
 0x114   :  { %1372 = vmatpush.bf16.msrb.mxu3 %v2100_v20  ;;  %v2161_v20 = vld [vmem:[#allocation3 + $0xe8] sm:$0xf0]  ;;  %1352 = vmatpush.bf16.msrb.mxu1 %v2112_v15  ;;  %v2417_v15 = vld [vmem:[#allocation3 + $0x94] sm:$0xf] }
 0x118   :  { %1373 = vmatpush.bf16.msrb.mxu3 %v2092_v32  ;;  %v2401_v32 = vld [vmem:[#allocation3 + $0x14] sm:$0xf]  ;;  %1397 = vmatpush.bf16.msra.mxu1 %v2236_v19 }
 0x11c   :  { %1374 = vmatpush.bf16.msrb.mxu3 %v2084_v49  ;;  %v2399_v49 = vld [vmem:[#allocation3 + $0x4] sm:$0xf]  ;;  %1398 = vmatpush.bf16.msra.mxu1 %v2228_v36 }
 0x120   :  { %1375 = vmatpush.bf16.msrb.mxu3 %v2076_v8  ;;  %v2129_v8 = vld [vmem:[#allocation3 + $0xa8] sm:$0xf0] }
 0x124   :  { %1376 = vmatpush.bf16.msrb.mxu3 %v2068_v26 }
 0x179   :  { %v3236_v62 = vpop.f32.mrf.mxu3 }
 0x17e   :  { %v913_v45 = vpop.f32.mrf.mxu0 }
 0x17f   :  { %v927_v13 = vpop.f32.mrf.mxu1 }
 0x180   :  { %v928_v54 = vadd.f32 %v927_v13, %v627_v27 }
 0x181   :  { %v3244_v5 = vpop.f32.mrf.mxu3 }
 0x184   :  { %v885_v52 = vpop.f32.mrf.mxu2 }
 0x185   :  { %v886_v28 = vadd.f32 %v885_v52, %v626_v51  ;;  %v2199_v52 = vld [vmem:[#allocation3 + $0x130] sm:$0xf] }
 0x186   :  { %v2200_v3 = vor.u32 %v2438_v53, %v2199_v52  ;;  %v2220_v52 = vor.u32 %v2441_v42, %v2217_v47  ;;  %v2423_v53 = vld [vmem:[#allocation3 + $0xc4] sm:$0xf] }
 0x187   :  { %v900_v43 = vadd.f32 %v3236_v62, %v886_v28  ;;  %v929_v18 = vpop.f32.mrf.mxu1  ;;  %v2183_v28 = vld [vmem:[#allocation3 + $0x110] sm:$0xf] }
 0x188   :  { %1362 = vmatpush.bf16.msrb.mxu2 %v2200_v3  ;;  %v930_v30 = vadd.f32 %v929_v18, %v627_v27  ;;  %v2184_v40 = vor.u32 %v2434_v29, %v2183_v28  ;;  %1399 = vmatpush.bf16.msra.mxu1 %v2220_v52  ;;  %v2121_v18 = vld [vmem:[#allocation3 + $0x98] sm:$0xf0]  ;;  %v2431_v29 = vld [vmem:[#allocation3 + $0x104] sm:$0xf] }
 0x189   :  { %v955_v62 = vpop.f32.mrf.mxu3  ;;  %v914_v0 = vadd.f32 %v913_v45, %v900_v43  ;;  %v2060_v43 = vor.u32 %v2401_v32, %v2057_v33  ;;  %v2116_v32 = vor.u32 %v2415_v24, %v2113_v25 }
 0x18b   :  { %v960_v46 = vmax.f32 %v914_v0, 0.0  ;;  %1377 = vmatpush.bf16.msrb.mxu3 %v2060_v43  ;;  %v2421_v0 = vld [vmem:[#allocation3 + $0xb4] sm:$0xf] }
 0x18c   :  { %v887_v23 = vpop.f32.mrf.mxu2 }
 0x18d   :  { %v888_v1 = vadd.f32 %v887_v23, %v626_v51  ;;  %v2427_v51 = vld [vmem:[#allocation3 + $0xe4] sm:$0xf]  ;;  %v2192_v23 = vor.u32 %v2436_v11, %v2191_v9  ;;  %v2132_v11 = vor.u32 %v2419_v7, %v2129_v8  ;;  %v2451_v7 = vld [vmem:[%s3344_s7 + $0x20] sm:$0xff] }
 0x18e   :  { %v2164_v31 = vor.u32 %v2427_v51, %v2161_v20  ;;  %v2435_v9 = vld [vmem:[#allocation3 + $0x124] sm:$0xf]  ;;  %v2433_v51 = vld [vmem:[#allocation3 + $0x114] sm:$0xf]  ;;  %v2185_v20 = vld [vmem:[#allocation3 + $0x118] sm:$0xf0] }
 0x18f   :  { %v902_v21 = vadd.f32 %v3244_v5, %v888_v1  ;;  %v915_v5 = vpop.f32.mrf.mxu0  ;;  %1363 = vmatpush.bf16.msrb.mxu2 %v2192_v23  ;;  %v2137_v1 = vld [vmem:[#allocation3 + $0xb8] sm:$0xf0]  ;;  %v2188_v23 = vor.u32 %v2433_v51, %v2185_v20  ;;  %v2457_v51 = vld [vmem:[%s3344_s7 + $0x50] sm:$0xff] }
 0x190   :  { %1385 = vmatpush.bf16.msra.mxu0 %v2164_v31  ;;  %v2140_v3 = vor.u32 %v2421_v0, %v2137_v1  ;;  %v2453_v0 = vld [vmem:[%s3344_s7 + $0x30] sm:$0xff]  ;;  %v2459_v8 = vld [vmem:[%s3344_s7 + $0x60] sm:$0xff] }
 0x191   :  { %v916_v38 = vadd.f32 %v915_v5, %v902_v21  ;;  %v957_v27 = vpop.f32.mrf.mxu3  ;;  %v2461_v1 = vld [vmem:[%s3344_s7 + $0x70] sm:$0xff] }
 0x193   :  { %v962_v56 = vmax.f32 %v916_v38, 0.0  ;;  %1364 = vmatpush.bf16.msrb.mxu2 %v2184_v40 }
 0x194   :  { %v941_v60 = vpop.f32.mrf.mxu2  ;;  %1386 = vmatpush.bf16.msra.mxu0 %v2156_v48 }
 0x195   :  { %v942_v2 = vadd.f32 %v941_v60, %v928_v54  ;;  %v2145_v54 = vld [vmem:[#allocation3 + $0xc8] sm:$0xf0]  ;;  %v2052_v60 = vor.u32 %v2399_v49, %v2049_v50 }
 0x196   :  { %v2148_v61 = vor.u32 %v2423_v53, %v2145_v54 }
 0x197   :  { %v956_v14 = vadd.f32 %v955_v62, %v942_v2  ;;  %v2209_v62 = vld [vmem:[#allocation3 + $0x148] sm:$0xf0]  ;;  %1365 = vmatpush.bf16.msrb.mxu2 %v2176_v59  ;;  %1378 = vmatpush.bf16.msrb.mxu3 %v2052_v60  ;;  %v2437_v2 = vld [vmem:[#allocation3 + $0x134] sm:$0xf] }
 0x198   :  { %v2212_v63 = vor.u32 %v2439_v57, %v2209_v62  ;;  %1387 = vmatpush.bf16.msra.mxu0 %v2148_v61  ;;  %v2204_v6 = vor.u32 %v2437_v2, %v2201_v4  ;;  %v2452_v2 = vld [vmem:[%s3344_s7 + $0x28] sm:$0xff] }
 0x199   :  { %v961_v22 = vmax.f32 %v956_v14, 0.0  ;;  %v2193_v14 = vld [vmem:[#allocation3 + $0x128] sm:$0xf0] }
 0x19a   :  { %1400 = vmatpush.bf16.msra.mxu1 %v2212_v63  ;;  %v2196_v17 = vor.u32 %v2435_v9, %v2193_v14  ;;  %v2462_v63 = vld [vmem:[%s3344_s7 + $0x78] sm:$0xff]  ;;  %v1077_v9 = vld [vmem:[%s3343_s6] sm:$0x3] }
 0x19b   :  { %v964_v13 = vmax.f32 %v960_v46, %v961_v22  ;;  %v2124_v22 = vor.u32 %v2417_v15, %v2121_v18  ;;  %1608 = vmatpush.bf16.msra.mxu2 %v2454_v35  ;;  %1621 = vmatpush.bf16.msra.mxu3 %v2462_v63  ;;  %v2458_v14 = vld [vmem:[%s3344_s7 + $0x58] sm:$0xff]  ;;  %v1079_v18 = vperm.slane %v1077_v9, 0  ;;  %v1080_v20 = vperm.slane %v1077_v9, 1 }
 0x19c   :  { %v943_v34 = vpop.f32.mrf.mxu2  ;;  %1388 = vmatpush.bf16.msra.mxu0 %v2140_v3  ;;  %v2460_v3 = vld [vmem:[%s3344_s7 + $0x68] sm:$0xff] }
 0x19d   :  { %966 = vst [vmem:[#allocation2] sm:$0xff] %v964_v13  ;;  %v944_v39 = vadd.f32 %v943_v34, %v930_v30  ;;  %v2177_v30 = vld [vmem:[#allocation3 + $0x108] sm:$0xf0] }
 0x19e   :  { %1401 = vmatpush.bf16.msra.mxu1 %v2204_v6  ;;  %v2180_v33 = vor.u32 %v2431_v29, %v2177_v30 }
 0x19f   :  { %v958_v45 = vadd.f32 %v957_v27, %v944_v39  ;;  %1609 = vmatpush.bf16.msra.mxu2 %v2453_v0  ;;  %1622 = vmatpush.bf16.msra.mxu3 %v2461_v1 }
 0x1a0   :  { %1389 = vmatpush.bf16.msra.mxu0 %v2132_v11  ;;  %v2450_v11 = vld [vmem:[%s3344_s7 + $0x18] sm:$0xff] }
 0x1a1   :  { %v963_v58 = vmax.f32 %v958_v45, 0.0 }
 0x1a2   :  { %1402 = vmatpush.bf16.msra.mxu1 %v2196_v17 }
 0x1a3   :  { %v965_v44 = vmax.f32 %v962_v56, %v963_v58  ;;  %1610 = vmatpush.bf16.msra.mxu2 %v2452_v2  ;;  %1623 = vmatpush.bf16.msra.mxu3 %v2460_v3 }
 0x1a4   :  { %1390 = vmatpush.bf16.msra.mxu0 %v2124_v22  ;;  %v2456_v22 = vld [vmem:[%s3344_s7 + $0x48] sm:$0xff] }
 0x1a5   :  { %967 = vst [vmem:[#allocation2 + $0x8] sm:$0xff] %v965_v44 }
 0x1a6   :  { %1403 = vmatpush.bf16.msra.mxu1 %v2188_v23 }
 0x1a7   :  { %1611 = vmatpush.bf16.msra.mxu2 %v2451_v7  ;;  %1624 = vmatpush.bf16.msra.mxu3 %v2459_v8 }
 0x1a8   :  { %1391 = vmatpush.bf16.msra.mxu0 %v2116_v32 }
 0x1aa   :  { %1404 = vmatpush.bf16.msra.mxu1 %v2180_v33 }
 0x1ab   :  { %1612 = vmatpush.bf16.msra.mxu2 %v2450_v11  ;;  %1625 = vmatpush.bf16.msra.mxu3 %v2458_v14 }
 0x1ac   :  { %v968_v10 = vld [vmem:[#allocation2] ss:$2 sm:$0xff]  ;;  %v969_v16 = vld [vmem:[#allocation2 + $0x1] ss:$2 sm:$0xff] }
 0x1ad   :  { %v970_v19 = vmax.f32 %v968_v10, %v969_v16 }
 0x1af   :  { %v972_v46 = vrot.slane %v970_v19, 4  ;;  %v974_v21 = vpack.c.bf16 %v970_v19, %v970_v19  ;;  %v2449_v19 = vld [vmem:[%s3344_s7 + $0x10] sm:$0xff]  ;;  %1626 = vmatpush.bf16.msra.mxu3 %v2457_v51 }
 0x1b0   :  { %1613 = vmatpush.bf16.msra.mxu2 %v2449_v19 }
 0x1b1   :  { %v975_v26 = vpack.c.bf16 %v972_v46, %v972_v46  ;;  %v978_v28 = vunpack.c.l.b16 %v974_v21  ;;  %v1013_v41 = vrot.slane %v974_v21, 6  ;;  %v2448_v21 = vld [vmem:[%s3344_s7 + $0x8] sm:$0xff] }
 0x1b3   :  { %v979_v13 = vunpack.c.l.b16 %v975_v26  ;;  %v980_v31 = vpack.c.b16 %v978_v28, %v978_v28  ;;  %v1015_v52 = vrot.slane %v975_v26, 6  ;;  %1627 = vmatpush.bf16.msra.mxu3 %v2456_v22  ;;  %v2467_v22 = vld [vmem:[%s3345_s8] ss:$0 sm:$0xff] }
 0x1b4   :  { %1614 = vmatpush.bf16.msra.mxu2 %v2448_v21 }
 0x1b5   :  { %v981_v5 = vpack.c.b16 %v979_v13, %v979_v13  ;;  %v983_v34 = vshrl.u32 %v980_v31, 16  ;;  %v986_v36 = vshll.u32 %v980_v31, 16  ;;  %v2447_v13 = vld [vmem:[%s3344_s7] sm:$0xff] }
 0x1b6   :  { %v2455_v31 = vld [vmem:[%s3344_s7 + $0x40] sm:$0xff] }
 0x1b7   :  { %v985_v37 = vrot.slane %v983_v34, 7  ;;  %v990_v12 = vshrl.u32 %v981_v5, 16  ;;  %v993_v38 = vshll.u32 %v981_v5, 16  ;;  %v1000_v39 = vrot.slane %v986_v36, 1  ;;  %1628 = vmatpush.bf16.msra.mxu3 %v2455_v31 }
 0x1b8   :  { %1615 = vmatpush.bf16.msra.mxu2 %v2447_v13 }
 0x1b9   :  { %v988_v42 = vor.u32 %v986_v36, %v985_v37  ;;  %v992_v47 = vrot.slane %v990_v12, 7  ;;  %v1001_v27 = vor.u32 %v1000_v39, %v983_v34  ;;  %v1002_v43 = vrot.slane %v993_v38, 1 }
 0x1bb   :  { %v995_v55 = vor.u32 %v993_v38, %v992_v47  ;;  %v998_v45 = vsel %vm2778_vm4, 0, %v988_v42  ;;  %v1003_v48 = vor.u32 %v1002_v43, %v990_v12  ;;  %v1009_v49 = vsel %vm3258_vm11, %v1001_v27, 0 }
 0x1bc   :  { %v1014_v50 = vrot.slane %v1009_v49, 4  ;;  %v1020_v53 = vsel %vm1006_vm9, %v998_v45, %v1013_v41 }
 0x1bd   :  { %v999_v54 = vsel %vm2778_vm4, 0, %v995_v55  ;;  %v1010_v56 = vsel %vm3258_vm11, %v1003_v48, 0 }
 0x1be   :  { %v1016_v58 = vrot.slane %v1010_v56, 4  ;;  %v1023_v59 = vsel %vm563_vm6, %v1020_v53, %v1014_v50  ;;  %v1026_v57 = vsel %vm1006_vm9, %v999_v54, %v1015_v52 }
 0x1bf   :  { %1083 = vst [vmem:[#allocation1] ss:$4 sm:$0xff] %v1023_v59 }
 0x1c0   :  { %v1028_v62 = vsel %vm563_vm6, %v1026_v57, %v1016_v58 }
 0x1c1   :  { %1085 = vst [vmem:[#allocation1 + $0x1] ss:$4 sm:$0xff] %v1028_v62 }
 0x1c8   :  { %v1086_v60 = vld.sshfl [vmem:[#allocation1] sm:$0xff pattern:$0x73625140]  ;;  %v1087_v44 = vld.sshfl [vmem:[#allocation1 + $0x8] sm:$0xff pattern:$0x73625140] }
 0x1c9   :  { %1340 = vmatmul.bf16.vlgmr.msrb.gmra.mxu0 %v1086_v60  ;;  %1353 = vmatmul.bf16.vlgmr.msrb.gmra.mxu1 %v1087_v44  ;;  %v1088_v61 = vld.sshfl [vmem:[#allocation1 + $0x10] sm:$0xff pattern:$0x73625140] }
 0x1ca   :  { %1366 = vmatmul.bf16.vlgmr.msrb.gmra.mxu2 %v1088_v61  ;;  %1379 = vmatmul.bf16.vlgmr.msrb.gmra.mxu3 %v1086_v60 }
 0x1d9   :  { %1392 = vmatmul.bf16.vlgmr.msra.gmra.mxu0 %v1087_v44  ;;  %1405 = vmatmul.bf16.vlgmr.msra.gmra.mxu1 %v1088_v61 }
 0x246   :  { %v1341_v4 = vpop.f32.mrf.mxu0  ;;  %v1354_v6 = vpop.f32.mrf.mxu1 }
 0x247   :  { %v1342_v46 = vadd.f32 %v1341_v4, %v1079_v18 }
 0x249   :  { %v1355_v29 = vadd.f32 %v1354_v6, %v1342_v46 }
 0x24d   :  { %v1367_v15 = vpop.f32.mrf.mxu2  ;;  %v1380_v10 = vpop.f32.mrf.mxu3 }
 0x24e   :  { %v1343_v16 = vpop.f32.mrf.mxu0  ;;  %v1356_v17 = vpop.f32.mrf.mxu1  ;;  %v1381_v23 = vadd.f32 %v1380_v10, %v1080_v20  ;;  %v1368_v32 = vadd.f32 %v1367_v15, %v1355_v29 }
 0x250   :  { %v1410_v34 = vmax.f32 %v1368_v32, 0.0 }
 0x255   :  { %v1369_v24 = vpop.f32.mrf.mxu2  ;;  %v1382_v25 = vpop.f32.mrf.mxu3 }
 0x256   :  { %v1393_v26 = vpop.f32.mrf.mxu0  ;;  %v1406_v28 = vpop.f32.mrf.mxu1 }
 0x257   :  { %v1394_v30 = vadd.f32 %v1393_v26, %v1381_v23 }
 0x259   :  { %v1407_v33 = vadd.f32 %v1406_v28, %v1394_v30 }
 0x25b   :  { %v1411_v5 = vmax.f32 %v1407_v33, 0.0 }
 0x25d   :  { %v1414_v36 = vrot.slane %v1411_v5, 4 }
 0x25e   :  { %v1395_v37 = vpop.f32.mrf.mxu0  ;;  %v1408_v12 = vpop.f32.mrf.mxu1 }
 0x25f   :  { %v1415_v38 = vsel %vm563_vm6, %v1410_v34, %v1414_v36  ;;  %v1416_v39 = vsel %vm563_vm6, %v1414_v36, %v1410_v34 }
 0x260   :  { %v1417_v40 = vrot.slane %v1416_v39, 4  ;;  %1418 = vst [vmem:[#allocation1] ss:$2 sm:$0xff] %v1415_v38 }
 0x262   :  { %1422 = vst [vmem:[#allocation1 + $0x10] ss:$2 sm:$0xff] %v1417_v40 }
 0x267   :  { %v1419_v42 = vld.sshfl [vmem:[#allocation1] sm:$0xff pattern:$0x75316420]  ;;  %v1420_v47 = vld.sshfl [vmem:[#allocation1 + $0x8] sm:$0xff pattern:$0x75316420] }
 0x268   :  { %v1429_v27 = vsel %vm563_vm6, %v1419_v42, 0.0  ;;  %v1436_v43 = vsel %vm563_vm6, %v1420_v47, 0.0 }
 0x269   :  { %v1423_v41 = vld.sshfl [vmem:[#allocation1 + $0x10] sm:$0xff pattern:$0x75316420]  ;;  %v1430_v55 = vrot.slane %v1429_v27, 4  ;;  %v1437_v45 = vrot.slane %v1436_v43, 4 }
 0x26a   :  { %v1443_v48 = vsel %vm563_vm6, %v1423_v41, 0.0  ;;  %v1424_v49 = vld.sshfl [vmem:[#allocation1 + $0x18] sm:$0xff pattern:$0x75316420] }
 0x26b   :  { %v1431_v50 = vadd.f32 %v1430_v55, %v1429_v27  ;;  %v1444_v52 = vrot.slane %v1443_v48, 4  ;;  %v1438_v53 = vadd.f32 %v1437_v45, %v1436_v43  ;;  %v1450_v54 = vsel %vm563_vm6, %v1424_v49, 0.0 }
 0x26c   :  { %v1451_v56 = vrot.slane %v1450_v54, 4 }
 0x26d   :  { %v1432_v58 = vrot.slane %v1431_v50, 2  ;;  %v1445_v59 = vadd.f32 %v1444_v52, %v1443_v48  ;;  %v1439_v57 = vrot.slane %v1438_v53, 2 }
 0x26e   :  { %v1452_v62 = vadd.f32 %v1451_v56, %v1450_v54 }
 0x26f   :  { %v1433_v60 = vadd.f32 %v1432_v58, %v1431_v50  ;;  %v1446_v44 = vrot.slane %v1445_v59, 2  ;;  %v1440_v61 = vadd.f32 %v1439_v57, %v1438_v53 }
 0x270   :  { %v1453_v35 = vrot.slane %v1452_v62, 2 }
 0x271   :  { %v1434_v63 = vrot.slane %v1433_v60, 1  ;;  %v1447_v0 = vadd.f32 %v1446_v44, %v1445_v59  ;;  %v1441_v1 = vrot.slane %v1440_v61, 1 }
 0x272   :  { %v1454_v2 = vadd.f32 %v1453_v35, %v1452_v62 }
 0x273   :  { %v1435_v3 = vadd.f32 %v1434_v63, %v1433_v60  ;;  %v1448_v4 = vrot.slane %v1447_v0, 1  ;;  %v1442_v6 = vadd.f32 %v1441_v1, %v1440_v61 }
 0x274   :  { %v1455_v7 = vrot.slane %v1454_v2, 1 }
 0x275   :  { %v1449_v8 = vadd.f32 %v1448_v4, %v1447_v0  ;;  %v1457_v9 = vpack.c.bf16 %v1435_v3, %v1435_v3  ;;  %v1458_v14 = vpack.c.bf16 %v1442_v6, %v1442_v6 }
 0x276   :  { %v1456_v11 = vadd.f32 %v1455_v7, %v1454_v2 }
 0x277   :  { %v1459_v15 = vpack.c.bf16 %v1449_v8, %v1449_v8  ;;  %v1501_v16 = vunpack.c.l.b16 %v1457_v9  ;;  %v1502_v18 = vunpack.c.l.b16 %v1458_v14 }
 0x278   :  { %v1460_v10 = vpack.c.bf16 %v1456_v11, %v1456_v11 }
 0x279   :  { %v1503_v17 = vunpack.c.l.b16 %v1459_v15 }
 0x27a   :  { %v1504_v19 = vunpack.c.l.b16 %v1460_v10 }
 0x27b   :  { %v1506_v51 = vsel %vm1505_vm12, %v1503_v17, %v1501_v16 }
 0x27c   :  { %v1508_v20 = vpack.c.b16 %v1506_v51, %v1506_v51  ;;  %v1507_v46 = vsel %vm1505_vm12, %v1504_v19, %v1502_v18 }
 0x27d   :  { %v1509_v21 = vpack.c.b16 %v1507_v46, %v1507_v46 }
 0x27e   :  { %1616 = vmatmul.bf16.vlgmr.msra.gmra.mxu2 %v1508_v20 }
 0x27f   :  { %1629 = vmatmul.bf16.vlgmr.msra.gmra.mxu3 %v1509_v21 }
 0x301   :  { %v1617_v23 = vpop.f32.mrf.mxu2 }
 0x302   :  { %v1618_v24 = vadd.f32 %v2467_v22, %v1617_v23  ;;  %v1630_v25 = vpop.f32.mrf.mxu3 }
 0x304   :  { %v1631_v26 = vadd.f32 %v1630_v25, %v1618_v24 }
 0x306   :  { %1635 = vst.msk [vmem:[#allocation6] sm:$0x3] %vm1634_vm13, %v1631_v26 }
 0x307   :  { %1646 = dma.vmem_to_hbm [thread:$0]  %s1642_s13, 32, %s1644_s16, [#allocation5]  }
 0x309   :  { %v1619_v28 = vpop.f32.mrf.mxu2 }
 0x30a   :  { %v1632_v29 = vpop.f32.mrf.mxu3 }
 0x30b   :  { %2518 = dma.done.wait [#allocation5], 32  }
 0x30c   :  { %2519 = vsyncadd [#allocation5], 4294967264 }
 0x30d   :  { %1651 = vsyncpa [#allocation4], 1 }
 0x30e   :  { %1652 = vsyncpa [#allocation5], 1 }

</bundles_post_ra>
